<compile_context>
chip_gen: v6e
topology: v6e:2x2x1
jax: 0.10.0
libtpu: 0.0.40
codegen_flags: <defaults>
</compile_context>

<pallas_src>
import functools
import math

import jax
import jax.numpy as jnp
from jax.experimental import pallas as pl
from jax.experimental.pallas import tpu as pltpu

LEAKY_SLOPE = 0.1
DIV_FLOW = 20.0
RGB_MAX = 255.0

VMEM_BUDGET = 20 * 1024 * 1024   # target per-call working set (headroom below limit)
VMEM_LIMIT = 32 * 1024 * 1024    # scoped-VMEM request; <= physical on all gens


def _round_up(x, m):
    return ((x + m - 1) // m) * m


def _pad_rows(m):
    """Pad the matmul M dimension: >= 32 rows, multiple of 32 (<=512) or 512."""
    if m <= 512:
        return max(32, _round_up(m, 32))
    return _round_up(m, 512)


def _footprint(tm, tk, tn, split):
    # double-buffered bf16 A, bf16 W, f32 out (+ f32 accumulator when K split).
    f = 2 * (tm * tk * 2) + 2 * (tk * tn * 2) + 2 * (tm * tn * 4) + 2 * tn * 4
    if split:
        f += tm * tn * 4
    return f


def _choose_tiles(mp, kp, np_):
    """Pick (tm, tn, tk, split_k).  Prefer full-K residency (weights fetched
    once per N tile, no accumulator / output revisit); fall back to a K grid
    axis only when the full-K working set would exceed the VMEM budget."""
    tm = mp if mp <= 512 else 512
    for tn in (512, 256, 128):
        if np_ % tn == 0 and _footprint(tm, kp, tn, False) <= VMEM_BUDGET:
            return tm, tn, kp, False
    if mp % 256 == 0 and tm > 256:
        for tn in (256, 128):
            if np_ % tn == 0 and _footprint(256, kp, tn, False) <= VMEM_BUDGET:
                return 256, tn, kp, False
    tm = 256 if (mp % 256 == 0 and tm > 256) else tm
    tn = 256 if np_ % 256 == 0 else 128
    tk = 128
    for cand in (2048, 1024, 512, 256):
        if kp % cand == 0 and _footprint(tm, cand, tn, True) <= VMEM_BUDGET:
            tk = cand
            break
    return tm, tn, tk, True


# ---------------------------------------------------------------------------
# Pallas matmul kernels: bf16 A/W operands, f32 accumulation, fused bias and
# (optionally column-masked) LeakyReLU epilogue.
# ---------------------------------------------------------------------------
def _apply_act(r, j_tile, tn, act_start, slope):
    """LeakyReLU on columns >= act_start (None = no activation, 0 = all)."""
    if act_start is None:
        return r
    act = jnp.where(r > 0, r, slope * r)
    if act_start == 0:
        return act
    col = j_tile * tn + jax.lax.broadcasted_iota(jnp.int32, r.shape, 1)
    return jnp.where(col >= act_start, act, r)


def _mm_fullk_kernel(a_ref, w_ref, b_ref, o_ref, *, act_start, slope):
    # grid = (N tiles, M tiles): the W / bias block index is constant across
    # the inner M axis, so each weight tile is DMA'd exactly once.
    r = jnp.dot(a_ref[...], w_ref[...], preferred_element_type=jnp.float32)
    r = r + b_ref[...]
    r = _apply_act(r, pl.program_id(0), o_ref.shape[1], act_start, slope)
    o_ref[...] = r.astype(o_ref.dtype)


def _mm_splitk_kernel(a_ref, w_ref, b_ref, o_ref, acc_ref, *, act_start, slope):
    @pl.when(pl.program_id(2) == 0)
    def _():
        acc_ref[...] = jnp.broadcast_to(b_ref[...], acc_ref.shape)

    acc_ref[...] += jnp.dot(a_ref[...], w_ref[...],
                            preferred_element_type=jnp.float32)

    @pl.when(pl.program_id(2) == pl.num_programs(2) - 1)
    def _():
        r = _apply_act(acc_ref[...], pl.program_id(1), o_ref.shape[1],
                       act_start, slope)
        o_ref[...] = r.astype(o_ref.dtype)


def matmul_packed(a_padded, m, pw, act_start, out_dtype):
    """a_padded: (Mp, Kp) bf16 patches; pw: packed weights; returns (m, n_valid)."""
    mp, kp = a_padded.shape
    np_ = pw["wm"].shape[1]
    tm, tn, tk, split = _choose_tiles(mp, kp, np_)
    if not split:
        out = pl.pallas_call(
            functools.partial(_mm_fullk_kernel, act_start=act_start,
                              slope=LEAKY_SLOPE),
            out_shape=jax.ShapeDtypeStruct((mp, np_), out_dtype),
            grid=(np_ // tn, mp // tm),
            in_specs=[
                pl.BlockSpec((tm, kp), lambda j, i: (i, 0)),
                pl.BlockSpec((kp, tn), lambda j, i: (0, j)),
                pl.BlockSpec((1, tn), lambda j, i: (0, j)),
            ],
            out_specs=pl.BlockSpec((tm, tn), lambda j, i: (i, j)),
            compiler_params=pltpu.CompilerParams(
                dimension_semantics=("parallel", "parallel"),
                vmem_limit_bytes=VMEM_LIMIT),
        )(a_padded, pw["wm"], pw["b"])
    else:
        out = pl.pallas_call(
            functools.partial(_mm_splitk_kernel, act_start=act_start,
                              slope=LEAKY_SLOPE),
            out_shape=jax.ShapeDtypeStruct((mp, np_), out_dtype),
            grid=(mp // tm, np_ // tn, kp // tk),
            in_specs=[
                pl.BlockSpec((tm, tk), lambda i, j, k: (i, k)),
                pl.BlockSpec((tk, tn), lambda i, j, k: (k, j)),
                pl.BlockSpec((1, tn), lambda i, j, k: (0, j)),
            ],
            out_specs=pl.BlockSpec((tm, tn), lambda i, j, k: (i, j)),
            scratch_shapes=[pltpu.VMEM((tm, tn), jnp.float32)],
            compiler_params=pltpu.CompilerParams(
                dimension_semantics=("parallel", "parallel", "arbitrary"),
                vmem_limit_bytes=VMEM_LIMIT),
        )(a_padded, pw["wm"], pw["b"])
    return out[:m, :pw["n_valid"]]


# ---------------------------------------------------------------------------
# Weight packing (done once at init): torch layouts -> padded bf16 (Kp, Np).
# ---------------------------------------------------------------------------
def _pack_matmul_weight(wm, bias):
    k, n = wm.shape
    kp = _round_up(k, 128)
    np_ = _round_up(n, 128)
    wm_p = jnp.pad(wm.astype(jnp.float32),
                   ((0, kp - k), (0, np_ - n))).astype(jnp.bfloat16)
    if bias is None:
        bias = jnp.zeros((n,), jnp.float32)
    b_p = jnp.pad(bias.astype(jnp.float32).reshape(1, n),
                  ((0, 0), (0, np_ - n)))
    return {"wm": wm_p, "b": b_p, "n_valid": n}


def _conv_weight_matrix(w):
    o, i, kh, kw = w.shape
    return jnp.transpose(w, (2, 3, 1, 0)).reshape(kh * kw * i, o)


def _deconv_subpixel_matrix(w):
    """4x4/stride-2/pad-1 ConvTranspose2d -> (9*Cin, 4*Cout) sub-pixel 3x3
    conv matrix (no input zero-dilation; followed by a 2x pixel shuffle)."""
    i, o = w.shape[0], w.shape[1]
    wc = jnp.zeros((3, 3, i, 2, 2, o), jnp.float32)
    for a in range(3):
        for bb in range(3):
            for r in range(2):
                for s in range(2):
                    ki = r + 3 - 2 * a
                    kj = s + 3 - 2 * bb
                    if 0 <= ki < 4 and 0 <= kj < 4:
                        wc = wc.at[a, bb, :, r, s, :].set(w[:, :, ki, kj])
    return wc.reshape(9 * i, 4 * o)


def pack_conv(p):
    w = p["w"]
    o, i, kh, kw = w.shape
    d = _pack_matmul_weight(_conv_weight_matrix(w), p["b"])
    d.update(dict(kh=kh, kw=kw, cin=i, cout=o, pad=(kh - 1) // 2))
    return d


def pack_deconv(p):
    w = p["w"]
    i, o = w.shape[0], w.shape[1]
    bias = None if p["b"] is None else jnp.tile(p["b"], 4)
    d = _pack_matmul_weight(_deconv_subpixel_matrix(w), bias)
    d.update(dict(kh=3, kw=3, cin=i, cout=o, pad=1))
    return d


def pack_fused_flow_deconv(conv_p, deconv_p):
    """Fuse predict_flow (3x3, 2 ch) with the sibling deconv that consumes the
    SAME input: one im2col + one matmul, columns [0:2]=flow, [2:]=deconv."""
    wm_c = _conv_weight_matrix(conv_p["w"])                  # (9*Cin, 2)
    wm_d = _deconv_subpixel_matrix(deconv_p["w"])            # (9*Cin, 4*Cout)
    wm = jnp.concatenate([wm_c, wm_d], axis=1)
    o = deconv_p["w"].shape[1]
    b_c = conv_p["b"] if conv_p["b"] is not None else jnp.zeros((2,), jnp.float32)
    b_d = (jnp.tile(deconv_p["b"], 4) if deconv_p["b"] is not None
           else jnp.zeros((4 * o,), jnp.float32))
    d = _pack_matmul_weight(wm, jnp.concatenate([b_c, b_d]))
    d.update(dict(kh=3, kw=3, cin=deconv_p["w"].shape[0], cout=o, pad=1))
    return d


def pack_network(net):
    packed = {}
    for name, layer in net.items():
        if name.startswith(("pf", "deconv", "up")):
            continue
        packed[name] = pack_conv(layer)
    for pf, dc in (("pf6", "deconv5"), ("pf5", "deconv4"),
                   ("pf4", "deconv3"), ("pf3", "deconv2")):
        packed[pf + "_" + dc] = pack_fused_flow_deconv(net[pf], net[dc])
    packed["pf2"] = pack_conv(net["pf2"])
    for up in ("up6to5", "up5to4", "up4to3", "up3to2"):
        packed[up] = pack_deconv(net[up])
    return packed


# ---------------------------------------------------------------------------
# Conv / deconv forward (bf16 im2col glue in JAX, matmul in Pallas).
# ---------------------------------------------------------------------------
def _im2col_bf16(x, kh, kw, stride, pad, kp):
    """bf16 im2col padded to (Mp, Kp) in one producer chain (no f32 patches)."""
    x = x.astype(jnp.bfloat16)
    b, h, w, c = x.shape
    xp = jnp.pad(x, ((0, 0), (pad, pad), (pad, pad), (0, 0)))
    ho = (h + 2 * pad - kh) // stride + 1
    wo = (w + 2 * pad - kw) // stride + 1
    cols = []
    for i in range(kh):
        for j in range(kw):
            cols.append(xp[:, i:i + stride * (ho - 1) + 1:stride,
                           j:j + stride * (wo - 1) + 1:stride, :])
    patches = jnp.concatenate(cols, axis=-1).reshape(b * ho * wo, kh * kw * c)
    m = b * ho * wo
    mp = _pad_rows(m)
    patches = jnp.pad(patches, ((0, mp - m), (0, kp - kh * kw * c)))
    return patches, m, ho, wo
    # TODO(synk): fuse the kh*kw tap loop into the matmul K axis (halo DMA /
    # Element index maps) so the patch matrix is never materialized in HBM.


def conv_block(pw, x, stride=1, act=True):
    patches, m, ho, wo = _im2col_bf16(x, pw["kh"], pw["kw"], stride, pw["pad"],
                                      pw["wm"].shape[0])
    # Encoder/feature convs keep bf16 activations; flow predictions stay f32.
    out_dtype = jnp.bfloat16 if act else jnp.float32
    y = matmul_packed(patches, m, pw, 0 if act else None, out_dtype)
    return y.reshape(x.shape[0], ho, wo, pw["cout"])


def _pixel_shuffle2(y, b, h, w, co):
    y = y.reshape(b, h, w, 2, 2, co)
    return jnp.transpose(y, (0, 1, 3, 2, 4, 5)).reshape(b, 2 * h, 2 * w, co)


def deconv_block(pw, x, act=True):
    b, h, w, _ = x.shape
    patches, m, _, _ = _im2col_bf16(x, 3, 3, 1, 1, pw["wm"].shape[0])
    out_dtype = jnp.bfloat16 if act else jnp.float32
    y = matmul_packed(patches, m, pw, 0 if act else None, out_dtype)
    return _pixel_shuffle2(y, b, h, w, pw["cout"])


def fused_flow_deconv_block(pw, x):
    """One matmul produces [flow(2) | deconv(4*Cout)]; LeakyReLU applied only
    to the deconv columns (act_start=2) inside the kernel."""
    b, h, w, _ = x.shape
    patches, m, _, _ = _im2col_bf16(x, 3, 3, 1, 1, pw["wm"].shape[0])
    y = matmul_packed(patches, m, pw, 2, jnp.float32)
    co = pw["cout"]
    y = y.reshape(b, h, w, 2 + 4 * co)
    flow = y[..., :2]
    d = _pixel_shuffle2(y[..., 2:], b, h, w, co)
    return flow, d


# ---------------------------------------------------------------------------
# Pallas kernel: FlowNetC correlation (pad=20, k=1, max_disp=20, stride2=2)
# fused with its LeakyReLU.  Grid (B, dy): per batch the bf16 f1/padded-f2
# blocks stay VMEM-resident across the 21 dy steps; the 21 dx results are
# stacked on a trailing axis so only a major-axis reorder remains outside.
# ---------------------------------------------------------------------------
MAX_DISP = 20
STRIDE2 = 2
NDISP = 2 * MAX_DISP // STRIDE2 + 1   # 21 per axis -> 441 channels


def _corr_kernel(f1_ref, f2_ref, o_ref, *, h, w, inv_c, slope):
    dy = pl.program_id(1) * STRIDE2
    f1 = f1_ref[...].astype(jnp.float32)                    # (1, H, W, C)
    outs = []
    for dj in range(NDISP):
        win = f2_ref[:, pl.ds(dy, h), pl.ds(dj * STRIDE2, w), :]
        s = jnp.sum(f1 * win.astype(jnp.float32), axis=-1) * inv_c
        outs.append(jnp.where(s > 0, s, slope * s))
    o_ref[...] = jnp.stack(outs, axis=-1)[None].astype(o_ref.dtype)


def correlation(f1, f2):
    b, h, w, c = f1.shape
    f1 = f1.astype(jnp.bfloat16)
    f2p = jnp.pad(f2.astype(jnp.bfloat16),
                  ((0, 0), (MAX_DISP, MAX_DISP), (MAX_DISP, MAX_DISP), (0, 0)))
    hp, wp = h + 2 * MAX_DISP, w + 2 * MAX_DISP
    out = pl.pallas_call(
        functools.partial(_corr_kernel, h=h, w=w, inv_c=1.0 / c,
                          slope=LEAKY_SLOPE),
        out_shape=jax.ShapeDtypeStruct((NDISP, b, h, w, NDISP), jnp.bfloat16),
        grid=(b, NDISP),
        in_specs=[
            pl.BlockSpec((1, h, w, c), lambda bi, di: (bi, 0, 0, 0)),
            pl.BlockSpec((1, hp, wp, c), lambda bi, di: (bi, 0, 0, 0)),
        ],
        out_specs=pl.BlockSpec((1, 1, h, w, NDISP),
                               lambda bi, di: (di, bi, 0, 0, 0)),
        compiler_params=pltpu.CompilerParams(
            dimension_semantics=("parallel", "arbitrary"),
            vmem_limit_bytes=VMEM_LIMIT),
    )(f1, f2p)
    # TODO(synk): band-tile over H (halo DMA) and move the channel reduce onto
    # the MXU for large resolutions; full residency is fine at this size.
    # (dy, B, H, W, dx) -> (B, H, W, dy*21 + dx)  (dy-major, matches CUDA op)
    return jnp.transpose(out, (1, 2, 3, 0, 4)).reshape(b, h, w, NDISP * NDISP)


# ---------------------------------------------------------------------------
# Plain-JAX glue: ChannelNorm, warping, upsampling.
# ---------------------------------------------------------------------------
def channel_norm(x):
    return jnp.sqrt(jnp.sum(x * x, axis=-1, keepdims=True))


def resample2d(img, flow):
    """Bilinear warp (Resample2d): sample img at (x+u, y+v), clamped borders."""
    # TODO(synk): move this gather off the XLA path into a Pallas row-gather.
    b, h, w, _ = img.shape
    ys = jnp.arange(h, dtype=jnp.float32)[None, :, None]
    xs = jnp.arange(w, dtype=jnp.float32)[None, None, :]
    xf = xs + flow[..., 0]
    yf = ys + flow[..., 1]
    x0 = jnp.floor(xf)
    y0 = jnp.floor(yf)
    ax = (xf - x0)[..., None]
    ay = (yf - y0)[..., None]
    x0i = jnp.clip(x0.astype(jnp.int32), 0, w - 1)
    x1i = jnp.clip(x0.astype(jnp.int32) + 1, 0, w - 1)
    y0i = jnp.clip(y0.astype(jnp.int32), 0, h - 1)
    y1i = jnp.clip(y0.astype(jnp.int32) + 1, 0, h - 1)
    bidx = jnp.arange(b)[:, None, None]
    v00 = img[bidx, y0i, x0i]
    v01 = img[bidx, y0i, x1i]
    v10 = img[bidx, y1i, x0i]
    v11 = img[bidx, y1i, x1i]
    return (1 - ay) * ((1 - ax) * v00 + ax * v01) + ay * ((1 - ax) * v10 + ax * v11)


def upsample_bilinear4(x):
    b, h, w, c = x.shape
    return jax.image.resize(x, (b, 4 * h, 4 * w, c), method="bilinear")


def upsample_nearest4(x):
    return jnp.repeat(jnp.repeat(x, 4, axis=1), 4, axis=2)


# ---------------------------------------------------------------------------
# Deterministic parameter initialization (xavier_uniform weights, U(0,1) bias).
# ---------------------------------------------------------------------------
class KeyGen:
    def __init__(self, seed):
        self._key = jax.random.PRNGKey(seed)

    def __call__(self):
        self._key, k = jax.random.split(self._key)
        return k


def _xavier_uniform(key, shape):
    fan_in = shape[1] * shape[2] * shape[3]
    fan_out = shape[0] * shape[2] * shape[3]
    a = math.sqrt(6.0 / (fan_in + fan_out))
    return jax.random.uniform(key, shape, jnp.float32, -a, a)


def make_conv(kg, cin, cout, k, bias=True):
    w = _xavier_uniform(kg(), (cout, cin, k, k))
    b = jax.random.uniform(kg(), (cout,), jnp.float32, 0.0, 1.0) if bias else None
    return {"w": w, "b": b}


def make_deconv(kg, cin, cout, k=4):
    return {"w": _xavier_uniform(kg(), (cin, cout, k, k)), "b": None}


def _init_refinement(p, kg):
    p["deconv5"] = make_deconv(kg, 1024, 512)
    p["deconv4"] = make_deconv(kg, 1026, 256)
    p["deconv3"] = make_deconv(kg, 770, 128)
    p["deconv2"] = make_deconv(kg, 386, 64)
    p["pf6"] = make_conv(kg, 1024, 2, 3)
    p["pf5"] = make_conv(kg, 1026, 2, 3)
    p["pf4"] = make_conv(kg, 770, 2, 3)
    p["pf3"] = make_conv(kg, 386, 2, 3)
    p["pf2"] = make_conv(kg, 194, 2, 3)
    p["up6to5"] = make_deconv(kg, 2, 2)
    p["up5to4"] = make_deconv(kg, 2, 2)
    p["up4to3"] = make_deconv(kg, 2, 2)
    p["up3to2"] = make_deconv(kg, 2, 2)
    return p


def init_flownetc(kg):
    p = {}
    p["conv1"] = make_conv(kg, 3, 64, 7)
    p["conv2"] = make_conv(kg, 64, 128, 5)
    p["conv3"] = make_conv(kg, 128, 256, 5)
    p["conv_redir"] = make_conv(kg, 256, 32, 1)
    p["conv3_1"] = make_conv(kg, 473, 256, 3)
    p["conv4"] = make_conv(kg, 256, 512, 3)
    p["conv4_1"] = make_conv(kg, 512, 512, 3)
    p["conv5"] = make_conv(kg, 512, 512, 3)
    p["conv5_1"] = make_conv(kg, 512, 512, 3)
    p["conv6"] = make_conv(kg, 512, 1024, 3)
    p["conv6_1"] = make_conv(kg, 1024, 1024, 3)
    return _init_refinement(p, kg)


def init_flownets(kg, in_ch=12):
    p = {}
    p["conv1"] = make_conv(kg, in_ch, 64, 7)
    p["conv2"] = make_conv(kg, 64, 128, 5)
    p["conv3"] = make_conv(kg, 128, 256, 5)
    p["conv3_1"] = make_conv(kg, 256, 256, 3)
    p["conv4"] = make_conv(kg, 256, 512, 3)
    p["conv4_1"] = make_conv(kg, 512, 512, 3)
    p["conv5"] = make_conv(kg, 512, 512, 3)
    p["conv5_1"] = make_conv(kg, 512, 512, 3)
    p["conv6"] = make_conv(kg, 512, 1024, 3)
    p["conv6_1"] = make_conv(kg, 1024, 1024, 3)
    return _init_refinement(p, kg)


# ---------------------------------------------------------------------------
# FlowNetC / FlowNetS forwards (NHWC).
# ---------------------------------------------------------------------------
def _refinement(p, c2, c3, c4, c5, c6):
    flow6, d5 = fused_flow_deconv_block(p["pf6_deconv5"], c6)
    flow6_up = deconv_block(p["up6to5"], flow6, act=False)
    cat5 = jnp.concatenate([c5, d5, flow6_up], axis=-1)
    flow5, d4 = fused_flow_deconv_block(p["pf5_deconv4"], cat5)
    flow5_up = deconv_block(p["up5to4"], flow5, act=False)
    cat4 = jnp.concatenate([c4, d4, flow5_up], axis=-1)
    flow4, d3 = fused_flow_deconv_block(p["pf4_deconv3"], cat4)
    flow4_up = deconv_block(p["up4to3"], flow4, act=False)
    cat3 = jnp.concatenate([c3, d3, flow4_up], axis=-1)
    flow3, d2 = fused_flow_deconv_block(p["pf3_deconv2"], cat3)
    flow3_up = deconv_block(p["up3to2"], flow3, act=False)
    cat2 = jnp.concatenate([c2, d2, flow3_up], axis=-1)
    return conv_block(p["pf2"], cat2, act=False)


def flownetc_forward(p, x):
    b = x.shape[0]
    # img1/img2 share conv1..conv3 weights: stack along batch, run once.
    x12 = jnp.concatenate([x[..., :3], x[..., 3:]], axis=0)
    c1 = conv_block(p["conv1"], x12, stride=2)
    c2 = conv_block(p["conv2"], c1, stride=2)
    c3 = conv_block(p["conv3"], c2, stride=2)
    c3a, c3b = c3[:b], c3[b:]
    corr = correlation(c3a, c3b)
    redir = conv_block(p["conv_redir"], c3a, stride=1)
    c3_1 = conv_block(p["conv3_1"], jnp.concatenate([redir, corr], axis=-1))
    c4 = conv_block(p["conv4_1"], conv_block(p["conv4"], c3_1, stride=2))
    c5 = conv_block(p["conv5_1"], conv_block(p["conv5"], c4, stride=2))
    c6 = conv_block(p["conv6_1"], conv_block(p["conv6"], c5, stride=2))
    return _refinement(p, c2[:b], c3_1, c4, c5, c6)


def flownets_forward(p, x):
    c1 = conv_block(p["conv1"], x, stride=2)
    c2 = conv_block(p["conv2"], c1, stride=2)
    c3 = conv_block(p["conv3_1"], conv_block(p["conv3"], c2, stride=2))
    c4 = conv_block(p["conv4_1"], conv_block(p["conv4"], c3, stride=2))
    c5 = conv_block(p["conv5_1"], conv_block(p["conv5"], c4, stride=2))
    c6 = conv_block(p["conv6_1"], conv_block(p["conv6"], c5, stride=2))
    return _refinement(p, c2, c3, c4, c5, c6)


# ---------------------------------------------------------------------------
# FlowNet2CSS top-level forward.
# ---------------------------------------------------------------------------
def flownet2css_forward(params, inputs, rgb_max=RGB_MAX, div_flow=DIV_FLOW):
    b, c, _, h, w = inputs.shape
    rgb_mean = inputs.reshape(b, c, -1).mean(axis=-1)[:, :, None, None, None]
    x = (inputs - rgb_mean) / rgb_max
    x_cat = jnp.concatenate([x[:, :, 0], x[:, :, 1]], axis=1)       # (B,6,H,W)
    xn = jnp.transpose(x_cat, (0, 2, 3, 1)).astype(jnp.float32)     # NHWC
    img1, img2 = xn[..., :3], xn[..., 3:]

    flow2_c = flownetc_forward(params["flownetc"], xn)              # (B,H/4,W/4,2)
    flow_c = upsample_bilinear4(flow2_c * div_flow)
    warped = resample2d(img2, flow_c)
    norm_diff = channel_norm(img1 - warped)
    concat1 = jnp.concatenate([xn, warped, flow_c / div_flow, norm_diff], axis=-1)

    flow2_s1 = flownets_forward(params["flownets_1"], concat1)
    flow_s1 = upsample_bilinear4(flow2_s1 * div_flow)
    warped = resample2d(img2, flow_s1)
    norm_diff = channel_norm(img1 - warped)
    concat2 = jnp.concatenate([xn, warped, flow_s1 / div_flow, norm_diff], axis=-1)

    flow2_s2 = flownets_forward(params["flownets_2"], concat2)
    out = upsample_nearest4(flow2_s2 * div_flow)                    # (B,H,W,2)
    return jnp.transpose(out, (0, 3, 1, 2))                         # (B,2,H,W)


if __name__ == "__main__":
    # Parameters (deterministic, synthetic), packed once for the Pallas matmuls.
    kg = KeyGen(1234)
    raw_params = {
        "flownetc": init_flownetc(kg),
        "flownets_1": init_flownets(kg),
        "flownets_2": init_flownets(kg),
    }
    params = {name: pack_network(net) for name, net in raw_params.items()}

    # Deterministic example input: (B=2, C=3, frames=2, H=64, W=64).
    # H, W must be multiples of 64 (six stride-2 stages in FlowNetC/S).
    inputs = jax.random.uniform(jax.random.PRNGKey(0), (2, 3, 2, 64, 64),
                                jnp.float32, 0.0, 255.0)

    out = flownet2css_forward(params, inputs)
    out = jax.block_until_ready(out)
    assert out.shape == (2, 2, 64, 64), out.shape
    assert jnp.all(jnp.isfinite(out))
    print("KERNEL_OK")
</pallas_src>

<mosaic_0001>
module attributes {stable_mosaic.version = 11 : i64} {
  func.func @_mm_fullk_kernel(%arg0: i32, %arg1: i32, %arg2: memref<512x256xbf16, #tpu.memory_space<vmem>>, %arg3: memref<256x128xbf16, #tpu.memory_space<vmem>>, %arg4: memref<1x128xf32, #tpu.memory_space<vmem>>, %arg5: memref<512x128xbf16, #tpu.memory_space<vmem>>) attributes {dimension_semantics = [#tpu.dimension_semantics<parallel>, #tpu.dimension_semantics<parallel>], iteration_bounds = array<i64: 1, 8>, scalar_prefetch = 0 : i64, scratch_operands = 0 : i64, tpu.core_type = #tpu.core_type<tc>, window_params = [{transform_indices = @transform_0, window_bounds = array<i64: 512, 256>}, {transform_indices = @transform_1, window_bounds = array<i64: 256, 128>}, {transform_indices = @transform_2, window_bounds = array<i64: 1, 128>}, {transform_indices = @transform_3, window_bounds = array<i64: 512, 128>}]} {
    %c0 = arith.constant 0 : index
    %c0_0 = arith.constant 0 : index
    %0 = vector.load %arg2[%c0, %c0_0] : memref<512x256xbf16, #tpu.memory_space<vmem>>, vector<512x256xbf16>
    %c0_1 = arith.constant 0 : index
    %c0_2 = arith.constant 0 : index
    %1 = vector.load %arg3[%c0_1, %c0_2] : memref<256x128xbf16, #tpu.memory_space<vmem>>, vector<256x128xbf16>
    %cst = arith.constant dense<0.000000e+00> : vector<512x128xf32>
    %2 = tpu.matmul %0, %1, %cst {dimension_numbers = #tpu.dot_dimension_numbers<[1], [0], [0], [1], [0, 0, 1, 1], [], []>} : vector<512x256xbf16>, vector<256x128xbf16>, vector<512x128xf32> -> vector<512x128xf32>
    %c0_3 = arith.constant 0 : index
    %c0_4 = arith.constant 0 : index
    %3 = vector.load %arg4[%c0_3, %c0_4] : memref<1x128xf32, #tpu.memory_space<vmem>>, vector<1x128xf32>
    %4 = vector.broadcast %3 : vector<1x128xf32> to vector<512x128xf32>
    %5 = arith.addf %2, %4 : vector<512x128xf32>
    %cst_5 = arith.constant 0.000000e+00 : f32
    %6 = vector.broadcast %cst_5 : f32 to vector<512x128xf32>
    %7 = arith.cmpf ogt, %5, %6 : vector<512x128xf32>
    %cst_6 = arith.constant 1.000000e-01 : f32
    %8 = vector.broadcast %cst_6 : f32 to vector<512x128xf32>
    %9 = arith.mulf %8, %5 : vector<512x128xf32>
    %10 = arith.select %7, %5, %9 : vector<512x128xi1>, vector<512x128xf32>
    %11 = arith.truncf %10 : vector<512x128xf32> to vector<512x128xbf16>
    %c0_7 = arith.constant 0 : index
    %c0_8 = arith.constant 0 : index
    %12 = vector.load %arg5[%c0_7, %c0_8] : memref<512x128xbf16, #tpu.memory_space<vmem>>, vector<512x128xbf16>
    tpu.vector_store %arg5[%c0_7, %c0_8], %11 {strides = array<i32>} : memref<512x128xbf16, #tpu.memory_space<vmem>>, vector<512x128xbf16>,
    return
  }
  func.func @transform_0(%arg0: i32, %arg1: i32) -> (i32, i32) {
    %c0_i32 = arith.constant 0 : i32
    %c0_i32_0 = arith.constant 0 : i32
    return %arg1, %c0_i32 : i32, i32
  }
  func.func @transform_1(%arg0: i32, %arg1: i32) -> (i32, i32) {
    %c0_i32 = arith.constant 0 : i32
    %c0_i32_0 = arith.constant 0 : i32
    return %c0_i32, %arg0 : i32, i32
  }
  func.func @transform_2(%arg0: i32, %arg1: i32) -> (i32, i32) {
    %c0_i32 = arith.constant 0 : i32
    %c0_i32_0 = arith.constant 0 : i32
    return %c0_i32, %arg0 : i32, i32
  }
  func.func @transform_3(%arg0: i32, %arg1: i32) -> (i32, i32) {
    %c0_i32 = arith.constant 0 : i32
    return %arg1, %arg0 : i32, i32
  }
}

</mosaic_0001>

<bundles_post_ra>
// kernel: tpu_custom_call.1
= control target key start
LH: loop header
LB: loop body
LE: loop exit
PB: predicated region body
PF: predicated region fallthrough
CT: control target
= control target key end

     0   :  { %8 = vsyncpa [#allocation3], 0  ;;  %s2929_s0 = inlined_call_operand.hbm [shape: bf16[4096,256], index: 0, kind: input, shape index: {}]   ;;  %s2930_s1 = inlined_call_operand.hbm [shape: bf16[256,128], index: 1, kind: input, shape index: {}]   ;;  %s2931_s2 = inlined_call_operand.hbm [shape: f32[1,128], index: 2, kind: input, shape index: {}]   ;;  %s2932_s3 = inlined_call_operand.hbm [shape: bf16[4096,128], index: 3, kind: output, shape index: {}]  }
   0x1   :  { %10 = vsyncpa [#allocation3 + $0x1], 0 }
   0x2   :  { %11 = vsyncpa [#allocation6], 0 }
   0x3   :  { %12 = vsyncpa [#allocation4], 0 }
   0x4   :  { %14 = vsyncpa [#allocation4 + $0x1], 0  ;;  %s2543_s12 = smov 0   ;;  %s2545_s13 = smov 0  }
   0x5   :  { %s2547_s14 = smov 0   ;;  %s2549_s15 = smov 0  }
   0x6   :  { %s2551_s16 = smov 0   ;;  %s2553_s17 = smov 0  }
   0x7 LB: > { %s1689_s18 = sadd.s32 4294967295, %s2510_s17   ;;  %s1690_s19 = sadd.s32 4294967294, %s2510_s17   ;;  %s2510_s17 = sphi %s2553_s17, %s20_s17   ;;  %s2506_s16 = sphi %s2551_s16, %s2949_s16   ;;  %s2502_s15 = sphi %s2549_s15, %s2948_s15   ;;  %s2498_s14 = sphi %s2547_s14, %s2947_s14   ;;  %s2494_s13 = sphi %s2545_s13, %s2946_s13   ;;  %s2490_s12 = sphi %s2543_s12, %s2945_s12  }
   0x8   : > { %p52_p0 = scmp.ne.s32.totalorder %s2494_s13, %s2490_s12  ;;  %p2577_p1 = scmp.eq.s32.totalorder %s1689_s18, 0 }
   0x9   : > { %p2581_p2 = scmp.eq.s32.totalorder %s1689_s18, 7  ;;  %p136_p3 = scmp.eq.s32.totalorder %s1690_s19, 7 }
   0xa   : > { %s2935_s20 = scalar_select %p2577_p1, 1, 0 }
   0xb   : > { %p2587_p4 = por %p2577_p1, %p52_p0  ;;  %p1691_p5 = scmp.ge.s32.totalorder %s2510_s17, 1 }
   0xc   : > { %p2592_p6 = por %p136_p3, %p52_p0  ;;  %p143_p7 = scmp.lt.s32.totalorder %s2510_s17, 9 }
   0xd   : > { %s2512_s25 = smov [#allocation5]   ;;  %s2513_s28 = smov [#allocation7]  }
   0xe   : > { %s2938_s23 = scalar_select %p2592_p6, 1, 0 }
   0xf   : > { %p2597_p8 = pnand %p1691_p5, %p143_p7  ;;  %s157_s26 = sshll.u32 %s2512_s25, 4  ;;  %s158_s26 = int_to_ptr.vmem [resolvable:$true] %s157_s26 }
  0x10   : > { %s173_s29 = sshll.u32 %s2513_s28, 4  ;;  %s2357_s30 = scalar_lea.vmem %s158_s26, 2048  ;;  %s174_s29 = int_to_ptr.vmem [resolvable:$true] %s173_s29 }
  0x11   : > { %p2156_p9 = pneg %p2597_p8  ;;  %p2358_p12 = scmp.ne.s32.totalorder %s158_s26, %s2357_s30 }
  0x12   : > { %p2365_p3 = scmp.lt.s32.totalorder %s158_s26, %s158_s26  ;;  %p2366_p5 = scmp.lt.s32.totalorder %s2357_s30, %s2357_s30 }
  0x13   : > { %p2605_p10 = pnand %p2156_p9, %p2577_p1 }
  0x14   : > { %p2367_p7 = por %p2366_p5, %p2365_p3 }
  0x15   : > { %p2348_p11 = pneg %p2605_p10 }
  0x17   : > { %p2360_p13 = pnand %p2358_p12, %p2348_p11 }
  0x19   : > { %p2361_p0 = pneg %p2360_p13 }
  0x1b   : > { %p2368_p9 = pnand %p2367_p7, %p2361_p0 }
  0x1d   : > { %2371 = shalt.err (!%p2368_p9)
}
  0x1e   : > { %s2514_s4 = smov 64   ;;  %s2515_s5 = smov 4  }
  0x1f   : > { %2159 = dma.hbm_to_vmem [thread:$0]  (!%p2605_p10), %s2930_s1, 2048, %s158_s26, [#allocation6], %s2514_s4, %s2514_s4, %s2515_s5  }
  0x20   : > { %s2383_s8 = scalar_lea.vmem %s174_s29, 16  ;;  %s2390_s9 = scalar_lea.vmem %s174_s29, 32 }
  0x21   : > { %p2384_p6 = scmp.ne.s32.totalorder %s174_s29, %s2383_s8  ;;  %p2391_p1 = scmp.lt.s32.totalorder %s174_s29, %s174_s29 }
  0x22   : > { %p2392_p3 = scmp.lt.s32.totalorder %s2390_s9, %s2383_s8 }
  0x23   : > { %p2386_p12 = pnand %p2384_p6, %p2348_p11 }
  0x24   : > { %p2393_p0 = por %p2392_p3, %p2391_p1 }
  0x25   : > { %p2387_p13 = pneg %p2386_p12 }
  0x27   : > { %p2394_p5 = pnand %p2393_p0, %p2387_p13 }
  0x29   : > { %2397 = shalt.err (!%p2394_p5)
}
  0x2a   : > { %2162 = dma.hbm_to_vmem [thread:$0]  (!%p2605_p10), %s2931_s2, 16, %s174_s29, [#allocation6]  }
  0x2b   : > { %s29_s18 = sadd.s32 1, %s2506_s16  ;;  %s39_s19 = sadd.s32 1, %s2498_s14 }
  0x2c   : > { %p30_p1 = scmp.ge.s32.totalorder %s29_s18, 8  ;;  %p46_p6 = scmp.ne.s32.totalorder %s2498_s14, %s2494_s13 }
  0x2d   : > { %p47_p11 = scmp.eq.s32.totalorder %s2510_s17, 0  ;;  %p2173_p7 = scmp.lt.s32.totalorder %s2510_s17, 8 }
  0x2e   : > { %s2951_s18 = smov (%p30_p1, %s29_s18), 0  ;;  %p2637_p12 = por %p2581_p2, %p46_p6 }
  0x2f   : > { %p48_p9 = por %p47_p11, %p46_p6  ;;  %s36_s26 = ssub.s32 %s2506_s16, %s2951_s18 }
  0x30   : > { %s184_s27 = sand.u32 1, %s2498_s14   ;;  %p37_p13 = scmp.eq.s32.totalorder %s36_s26, 0 }
  0x31   : > { %s1695_s28 = sshll.u32 %s184_s27, 9  ;;  %s1855_s29 = sshll.u32 %s2506_s16, 13 }
  0x32   : > { %s2646_s30 = scalar_select %p37_p13, %s2498_s14, %s39_s19  }
  0x33   : > { %s195_s6 = scalar_lea.hbm %s2929_s0, %s1855_s29  ;;  %s188_s7 = scalar_lea.vmem [#allocation2], %s1695_s28 }
  0x34   : > { %s196_s8 = sshll.u32 %s188_s7, 4  ;;  %p2653_p10 = pnand %p2173_p7, %p48_p9  ;;  %s197_s8 = int_to_ptr.vmem [resolvable:$true] %s196_s8 }
  0x35   : > { %s185_s9 = scalar_lea.sflag [#allocation3], %s184_s27  ;;  %s2411_s10 = scalar_lea.vmem %s197_s8, 8192 }
  0x36   : > { %p2400_p2 = pneg %p2653_p10  ;;  %p2412_p3 = scmp.ne.s32.totalorder %s197_s8, %s2411_s10 }
  0x37   : > { %s2516_s11 = smov [#allocation2]  }
  0x38   : > { %p2414_p0 = pnand %p2412_p3, %p2400_p2  ;;  %s2416_s19 = sshll.u32 %s2516_s11, 4  ;;  %s2417_s19 = int_to_ptr.vmem [resolvable:$false] %s2416_s19 }
  0x39   : > { %s2418_s26 = scalar_lea.vmem %s2417_s19, 16384  ;;  %p2419_p1 = scmp.lt.s32.totalorder %s197_s8, %s2417_s19 }
  0x3a   : > { %p2415_p5 = pneg %p2414_p0  ;;  %p2420_p6 = scmp.lt.s32.totalorder %s2418_s26, %s2411_s10 }
  0x3c   : > { %p2421_p11 = por %p2420_p6, %p2419_p1 }
  0x3e   : > { %p2422_p7 = pnand %p2421_p11, %p2415_p5 }
  0x40   : > { %2425 = shalt.err (!%p2422_p7)
}
  0x41   : > { %s2517_s28 = smov 128   ;;  %s2518_s29 = smov 8  }
  0x42   : > { %2166 = dma.hbm_to_vmem [thread:$0]  (!%p2653_p10), %s195_s6, 8192, %s197_s8, %s185_s9, %s2517_s28, %s2517_s28, %s2518_s29  }
  0x43   : > { %208 = sbr.rel (%p2597_p8) target bundleno = 479 (0x1df), region = 32  ;;  %s2664_s27 = sand.u32 (!%p2597_p8), 1, %s2494_s13  }
  0x44   : > { %s1700_s4 = sshll.u32 (!%p2597_p8), %s2664_s27, 9  ;;  %s211_s5 = scalar_lea.sflag (!%p2597_p8), [#allocation3], %s2664_s27 }
  0x45   : > { %s2668_s7 = scalar_lea.vmem (!%p2597_p8), [#allocation2], %s1700_s4 }
  0x48   : > { %2477 = dma.done.wait (%p2587_p4), %s211_s5, 8192  }
  0x49   : > { %2479 = vsyncadd (%p2587_p4), %s211_s5, 4294959104  ;;  %p2943_p9 = scmp.ne.s32.totalorder %s2935_s20, 0 }
  0x4b   : > { %2481 = dma.done.wait (%p2943_p9), [#allocation6], 2064  }
  0x4c   : > { %2483 = vsyncadd (%p2943_p9), [#allocation6], 4294965232  ;;  %v2519_v0 = vmov 0   ;;  %v2234_v1 = vld [vmem:[#allocation5 + $0x38] sm:$0xff]   ;;  %v2235_v2 = vld [vmem:[#allocation5 + $0x30] sm:$0xff]   ;;  %s1703_s20 = sshll.u32 %s2664_s27, 8 }
  0x4d   : > { %767 = vmatprep.subr.bf16.mxu0 %v2519_v0  ;;  %2112 = vmatprep.subr.bf16.mxu1 %v2519_v0  ;;  %v2236_v3 = vld [vmem:[#allocation5 + $0x28] sm:$0xff]   ;;  %v2237_v4 = vld [vmem:[#allocation5 + $0x20] sm:$0xff]   ;;  %v2238_v5 = vld [vmem:[#allocation5 + $0x18] sm:$0xff]   ;;  %s2783_s22 = scalar_lea.vmem [#allocation8], %s1703_s20  ;;  %s1920_s24 = sshll.u32 %s2502_s15, 12 }
  0x4e   : > { %768 = vmatpush1.bf16.msra.mxu0 %v2234_v1  ;;  %2128 = vmatpush1.bf16.msra.mxu1 %v2234_v1  ;;  %v2252_v6 = vld [vmem:[%s2668_s7 + $0x4] ss:$8 sps:$4 sm:$0xff]   ;;  %v2239_v7 = vld [vmem:[#allocation5 + $0x10] sm:$0xff]   ;;  %v2242_v11 = vld [vmem:[#allocation5 + $0x78] sm:$0xff]   ;;  %s1583_s6 = sshll.u32 %s2783_s22, 4  ;;  %s2878_s9 = scalar_lea.hbm %s2932_s3, %s1920_s24  ;;  %s2880_s6 = int_to_ptr.vmem [resolvable:$true] %s1583_s6 }
  0x4f   : > { %769 = vmatprep.subr.bf16.mxu0 %v2519_v0  ;;  %2113 = vmatprep.subr.bf16.mxu1 %v2519_v0  ;;  %v2255_v8 = vld [vmem:[%s2668_s7 + $0x104] ss:$8 sps:$4 sm:$0xff]   ;;  %v2243_v12 = vld [vmem:[#allocation5 + $0x70] sm:$0xff]   ;;  %v2246_v15 = vld [vmem:[#allocation5 + $0x58] sm:$0xff]   ;;  %s1569_s15 = scalar_lea.sflag [#allocation4], %s2664_s27  ;;  %s2426_s10 = scalar_lea.vmem %s2880_s6, 4096 }
  0x50   : > { %799 = vmatprep.mubr.bf16.mxu0 %v2252_v6  ;;  %927 = vmatprep.mubr.bf16.mxu1 %v2255_v8  ;;  %v2240_v9 = vld [vmem:[#allocation5 + $0x8] sm:$0xff]   ;;  %v2241_v10 = vld [vmem:[#allocation5] sm:$0xff]   ;;  %v2247_v16 = vld [vmem:[#allocation5 + $0x50] sm:$0xff]   ;;  %p2427_p4 = scmp.ne.s32.totalorder %s2880_s6, %s2426_s10  ;;  %s2520_s11 = smov [#allocation8]  }
  0x51   : > { %v2244_v13 = vld [vmem:[#allocation5 + $0x68] sm:$0xff]   ;;  %v2245_v14 = vld [vmem:[#allocation5 + $0x60] sm:$0xff]   ;;  %v2256_v21 = vld [vmem:[%s2668_s7 + $0x14] ss:$8 sps:$4 sm:$0xff]   ;;  %s2430_s19 = sshll.u32 %s2520_s11, 4  ;;  %s2431_s19 = int_to_ptr.vmem [resolvable:$false] %s2430_s19 }
  0x52   : > { %770 = vmatpush1.bf16.msra.mxu0 %v2235_v2  ;;  %2129 = vmatpush1.bf16.msra.mxu1 %v2235_v2  ;;  %v2248_v17 = vld [vmem:[#allocation5 + $0x48] sm:$0xff]   ;;  %v2249_v18 = vld [vmem:[#allocation5 + $0x40] sm:$0xff]   ;;  %v2258_v22 = vld [vmem:[%s2668_s7 + $0x114] ss:$8 sps:$4 sm:$0xff]   ;;  %p2428_p8 = pnand %p2427_p4, %p2637_p12  ;;  %s2432_s26 = scalar_lea.vmem %s2431_s19, 8192 }
  0x53   : > { %771 = vmatprep.subr.bf16.mxu0 %v2519_v0  ;;  %2114 = vmatprep.subr.bf16.mxu1 %v2519_v0  ;;  %v2250_v19 = vld [vmem:[%s2668_s7] ss:$8 sps:$4 sm:$0xff]   ;;  %v2260_v23 = vld [vmem:[%s2668_s7 + $0x10] ss:$8 sps:$4 sm:$0xff]   ;;  %v2262_v25 = vld [vmem:[%s2668_s7 + $0x24] ss:$8 sps:$4 sm:$0xff]   ;;  %p2433_p10 = scmp.lt.s32.totalorder %s2880_s6, %s2431_s19  ;;  %p2434_p2 = scmp.lt.s32.totalorder %s2432_s26, %s2426_s10 }
  0x54   : > { %v2253_v20 = vld [vmem:[%s2668_s7 + $0x100] ss:$8 sps:$4 sm:$0xff]   ;;  %v2261_v24 = vld [vmem:[%s2668_s7 + $0x110] ss:$8 sps:$4 sm:$0xff]   ;;  %v2264_v26 = vld [vmem:[%s2668_s7 + $0x124] ss:$8 sps:$4 sm:$0xff]   ;;  %p2429_p13 = pneg %p2428_p8 }
  0x55   : > { %v2266_v27 = vld [vmem:[%s2668_s7 + $0x20] ss:$8 sps:$4 sm:$0xff]   ;;  %v2268_v29 = vld [vmem:[%s2668_s7 + $0x34] ss:$8 sps:$4 sm:$0xff]   ;;  %v2272_v31 = vld [vmem:[%s2668_s7 + $0x30] ss:$8 sps:$4 sm:$0xff]   ;;  %p2435_p3 = por %p2434_p2, %p2433_p10 }
  0x56   : > { %772 = vmatpush1.bf16.msra.mxu0 %v2236_v3  ;;  %2130 = vmatpush1.bf16.msra.mxu1 %v2236_v3  ;;  %v2267_v28 = vld [vmem:[%s2668_s7 + $0x120] ss:$8 sps:$4 sm:$0xff]   ;;  %v2270_v30 = vld [vmem:[%s2668_s7 + $0x134] ss:$8 sps:$4 sm:$0xff]   ;;  %v2273_v32 = vld [vmem:[%s2668_s7 + $0x130] ss:$8 sps:$4 sm:$0xff]  }
  0x57   : > { %773 = vmatprep.subr.bf16.mxu0 %v2519_v0  ;;  %2115 = vmatprep.subr.bf16.mxu1 %v2519_v0  ;;  %v2274_v33 = vld [vmem:[%s2668_s7 + $0x44] ss:$8 sps:$4 sm:$0xff]   ;;  %v2278_v35 = vld [vmem:[%s2668_s7 + $0x40] ss:$8 sps:$4 sm:$0xff]   ;;  %v2280_v37 = vld [vmem:[%s2668_s7 + $0x54] ss:$8 sps:$4 sm:$0xff]   ;;  %p2436_p0 = pnand %p2435_p3, %p2429_p13 }
  0x58   : > { %v2276_v34 = vld [vmem:[%s2668_s7 + $0x144] ss:$8 sps:$4 sm:$0xff]   ;;  %v2279_v36 = vld [vmem:[%s2668_s7 + $0x140] ss:$8 sps:$4 sm:$0xff]   ;;  %v2282_v38 = vld [vmem:[%s2668_s7 + $0x154] ss:$8 sps:$4 sm:$0xff]  }
  0x59   : > { %v2284_v39 = vld [vmem:[%s2668_s7 + $0x50] ss:$8 sps:$4 sm:$0xff]   ;;  %v2286_v41 = vld [vmem:[%s2668_s7 + $0x64] ss:$8 sps:$4 sm:$0xff]   ;;  %v2290_v43 = vld [vmem:[%s2668_s7 + $0x60] ss:$8 sps:$4 sm:$0xff]  }
  0x5a   : > { %774 = vmatpush1.bf16.msra.mxu0 %v2237_v4  ;;  %2131 = vmatpush1.bf16.msra.mxu1 %v2237_v4  ;;  %v2285_v40 = vld [vmem:[%s2668_s7 + $0x150] ss:$8 sps:$4 sm:$0xff]   ;;  %v2288_v42 = vld [vmem:[%s2668_s7 + $0x164] ss:$8 sps:$4 sm:$0xff]   ;;  %v2291_v44 = vld [vmem:[%s2668_s7 + $0x160] ss:$8 sps:$4 sm:$0xff]  }
  0x5b   : > { %775 = vmatprep.subr.bf16.mxu0 %v2519_v0  ;;  %2116 = vmatprep.subr.bf16.mxu1 %v2519_v0  ;;  %v2292_v45 = vld [vmem:[%s2668_s7 + $0x74] ss:$8 sps:$4 sm:$0xff]   ;;  %v2296_v47 = vld [vmem:[%s2668_s7 + $0x70] ss:$8 sps:$4 sm:$0xff]   ;;  %v2298_v49 = vld [vmem:[%s2668_s7 + $0x84] ss:$8 sps:$4 sm:$0xff]  }
  0x5c   : > { %v2294_v46 = vld [vmem:[%s2668_s7 + $0x174] ss:$8 sps:$4 sm:$0xff]   ;;  %v2297_v48 = vld [vmem:[%s2668_s7 + $0x170] ss:$8 sps:$4 sm:$0xff]   ;;  %v2300_v50 = vld [vmem:[%s2668_s7 + $0x184] ss:$8 sps:$4 sm:$0xff]  }
  0x5d   : > { %v2302_v51 = vld [vmem:[%s2668_s7 + $0x80] ss:$8 sps:$4 sm:$0xff]   ;;  %v2304_v53 = vld [vmem:[%s2668_s7 + $0x94] ss:$8 sps:$4 sm:$0xff]   ;;  %v2308_v55 = vld [vmem:[%s2668_s7 + $0x90] ss:$8 sps:$4 sm:$0xff]  }
  0x5e   : > { %776 = vmatpush1.bf16.msra.mxu0 %v2238_v5  ;;  %2132 = vmatpush1.bf16.msra.mxu1 %v2238_v5  ;;  %v2303_v52 = vld [vmem:[%s2668_s7 + $0x180] ss:$8 sps:$4 sm:$0xff]   ;;  %v2306_v54 = vld [vmem:[%s2668_s7 + $0x194] ss:$8 sps:$4 sm:$0xff]   ;;  %v2309_v56 = vld [vmem:[%s2668_s7 + $0x190] ss:$8 sps:$4 sm:$0xff]  }
  0x5f   : > { %777 = vmatprep.subr.bf16.mxu0 %v2519_v0  ;;  %2117 = vmatprep.subr.bf16.mxu1 %v2519_v0  ;;  %v2310_v57 = vld [vmem:[%s2668_s7 + $0xa4] ss:$8 sps:$4 sm:$0xff]   ;;  %v2314_v59 = vld [vmem:[%s2668_s7 + $0xa0] ss:$8 sps:$4 sm:$0xff]   ;;  %v2316_v61 = vld [vmem:[%s2668_s7 + $0xb4] ss:$8 sps:$4 sm:$0xff]  }
  0x60   : > { %v2312_v58 = vld [vmem:[%s2668_s7 + $0x1a4] ss:$8 sps:$4 sm:$0xff]   ;;  %v2315_v60 = vld [vmem:[%s2668_s7 + $0x1a0] ss:$8 sps:$4 sm:$0xff]   ;;  %v2318_v62 = vld [vmem:[%s2668_s7 + $0x1b4] ss:$8 sps:$4 sm:$0xff]  }
  0x61   : > { %v2320_v63 = vld [vmem:[%s2668_s7 + $0xb0] ss:$8 sps:$4 sm:$0xff]   ;;  %v2322_v1 = vld [vmem:[%s2668_s7 + $0xc4] ss:$8 sps:$4 sm:$0xff]   ;;  %v2326_v3 = vld [vmem:[%s2668_s7 + $0xc0] ss:$8 sps:$4 sm:$0xff]  }
  0x62   : > { %778 = vmatpush1.bf16.msra.mxu0 %v2239_v7  ;;  %2133 = vmatpush1.bf16.msra.mxu1 %v2239_v7  ;;  %v2324_v2 = vld [vmem:[%s2668_s7 + $0x1c4] ss:$8 sps:$4 sm:$0xff]   ;;  %v2327_v4 = vld [vmem:[%s2668_s7 + $0x1c0] ss:$8 sps:$4 sm:$0xff]   ;;  %v2328_v5 = vld [vmem:[%s2668_s7 + $0xd4] ss:$8 sps:$4 sm:$0xff]  }
  0x63   : > { %779 = vmatprep.subr.bf16.mxu0 %v2519_v0  ;;  %2118 = vmatprep.subr.bf16.mxu1 %v2519_v0  ;;  %v2330_v6 = vld [vmem:[%s2668_s7 + $0x1d4] ss:$8 sps:$4 sm:$0xff]   ;;  %v2332_v7 = vld [vmem:[%s2668_s7 + $0xd0] ss:$8 sps:$4 sm:$0xff]  }
  0x64   : > { %v2333_v8 = vld [vmem:[%s2668_s7 + $0x1d0] ss:$8 sps:$4 sm:$0xff]  }
  0x66   : > { %780 = vmatpush1.bf16.msra.mxu0 %v2240_v9  ;;  %2134 = vmatpush1.bf16.msra.mxu1 %v2240_v9  ;;  %v2334_v9 = vld [vmem:[%s2668_s7 + $0xe4] ss:$8 sps:$4 sm:$0xff]  }
  0x67   : > { %781 = vmatprep.subr.bf16.mxu0 %v2519_v0  ;;  %2119 = vmatprep.subr.bf16.mxu1 %v2519_v0 }
  0x6a   : > { %782 = vmatpush1.bf16.msra.mxu0 %v2241_v10  ;;  %2135 = vmatpush1.bf16.msra.mxu1 %v2241_v10  ;;  %v2336_v10 = vld [vmem:[%s2668_s7 + $0x1e4] ss:$8 sps:$4 sm:$0xff]  }
  0x6b   : > { %783 = vmatprep.subr.bf16.mxu0 %v2519_v0  ;;  %2120 = vmatprep.subr.bf16.mxu1 %v2519_v0 }
  0x6e   : > { %784 = vmatpush2.bf16.msra.mxu0 %v2242_v11  ;;  %2136 = vmatpush2.bf16.msra.mxu1 %v2242_v11  ;;  %v2338_v11 = vld [vmem:[%s2668_s7 + $0xe0] ss:$8 sps:$4 sm:$0xff]  }
  0x6f   : > { %785 = vmatprep.subr.bf16.mxu0 %v2519_v0  ;;  %2121 = vmatprep.subr.bf16.mxu1 %v2519_v0 }
  0x72   : > { %786 = vmatpush2.bf16.msra.mxu0 %v2243_v12  ;;  %2137 = vmatpush2.bf16.msra.mxu1 %v2243_v12  ;;  %v2339_v12 = vld [vmem:[%s2668_s7 + $0x1e0] ss:$8 sps:$4 sm:$0xff]  }
  0x73   : > { %787 = vmatprep.subr.bf16.mxu0 %v2519_v0  ;;  %2122 = vmatprep.subr.bf16.mxu1 %v2519_v0 }
  0x76   : > { %788 = vmatpush2.bf16.msra.mxu0 %v2244_v13  ;;  %2138 = vmatpush2.bf16.msra.mxu1 %v2244_v13  ;;  %v2340_v13 = vld [vmem:[%s2668_s7 + $0xf4] ss:$8 sps:$4 sm:$0xff]  }
  0x77   : > { %789 = vmatprep.subr.bf16.mxu0 %v2519_v0  ;;  %2123 = vmatprep.subr.bf16.mxu1 %v2519_v0 }
  0x7a   : > { %790 = vmatpush2.bf16.msra.mxu0 %v2245_v14  ;;  %2139 = vmatpush2.bf16.msra.mxu1 %v2245_v14  ;;  %v2342_v14 = vld [vmem:[%s2668_s7 + $0x1f4] ss:$8 sps:$4 sm:$0xff]  }
  0x7b   : > { %791 = vmatprep.subr.bf16.mxu0 %v2519_v0  ;;  %2124 = vmatprep.subr.bf16.mxu1 %v2519_v0 }
  0x7e   : > { %792 = vmatpush2.bf16.msra.mxu0 %v2246_v15  ;;  %2140 = vmatpush2.bf16.msra.mxu1 %v2246_v15  ;;  %v2344_v15 = vld [vmem:[%s2668_s7 + $0xf0] ss:$8 sps:$4 sm:$0xff]  }
  0x7f   : > { %793 = vmatprep.subr.bf16.mxu0 %v2519_v0  ;;  %2125 = vmatprep.subr.bf16.mxu1 %v2519_v0 }
  0x82   : > { %794 = vmatpush2.bf16.msra.mxu0 %v2247_v16  ;;  %2141 = vmatpush2.bf16.msra.mxu1 %v2247_v16  ;;  %v2345_v16 = vld [vmem:[%s2668_s7 + $0x1f0] ss:$8 sps:$4 sm:$0xff]  }
  0x83   : > { %795 = vmatprep.subr.bf16.mxu0 %v2519_v0  ;;  %2126 = vmatprep.subr.bf16.mxu1 %v2519_v0 }
  0x86   : > { %796 = vmatpush2.bf16.msra.mxu0 %v2248_v17  ;;  %2142 = vmatpush2.bf16.msra.mxu1 %v2248_v17  ;;  %v2774_v17 = vld [vmem:[#allocation7] ss:$0 sm:$0xff] }
  0x87   : > { %797 = vmatprep.subr.bf16.mxu0 %v2519_v0  ;;  %2127 = vmatprep.subr.bf16.mxu1 %v2519_v0  ;;  %v2321_v0 = vld [vmem:[%s2668_s7 + $0x1b0] ss:$8 sps:$4 sm:$0xff]  }
  0x8a   : > { %798 = vmatpush2.bf16.msra.mxu0 %v2249_v18  ;;  %2143 = vmatpush2.bf16.msra.mxu1 %v2249_v18 }
  0x8d   : > { %800 = vmatmul.mubr.bf16.vlgmr.msra.gmra.mxu0 %v2250_v19  ;;  %928 = vmatmul.mubr.bf16.vlgmr.msra.gmra.mxu1 %v2253_v20 }
  0x8e   : > { %807 = vmatprep.mubr.bf16.mxu0 %v2256_v21  ;;  %935 = vmatprep.mubr.bf16.mxu1 %v2258_v22 }
  0x95   : > { %808 = vmatmul.mubr.bf16.gmra.mxu0 %v2260_v23  ;;  %936 = vmatmul.mubr.bf16.gmra.mxu1 %v2261_v24 }
  0x96   : > { %815 = vmatprep.mubr.bf16.mxu0 %v2262_v25  ;;  %943 = vmatprep.mubr.bf16.mxu1 %v2264_v26 }
  0x9d   : > { %816 = vmatmul.mubr.bf16.gmra.mxu0 %v2266_v27  ;;  %944 = vmatmul.mubr.bf16.gmra.mxu1 %v2267_v28 }
  0x9e   : > { %823 = vmatprep.mubr.bf16.mxu0 %v2268_v29  ;;  %951 = vmatprep.mubr.bf16.mxu1 %v2270_v30 }
  0xa5   : > { %824 = vmatmul.mubr.bf16.gmra.mxu0 %v2272_v31  ;;  %952 = vmatmul.mubr.bf16.gmra.mxu1 %v2273_v32 }
  0xa6   : > { %831 = vmatprep.mubr.bf16.mxu0 %v2274_v33  ;;  %959 = vmatprep.mubr.bf16.mxu1 %v2276_v34 }
  0xad   : > { %832 = vmatmul.mubr.bf16.gmra.mxu0 %v2278_v35  ;;  %960 = vmatmul.mubr.bf16.gmra.mxu1 %v2279_v36 }
  0xae   : > { %839 = vmatprep.mubr.bf16.mxu0 %v2280_v37  ;;  %967 = vmatprep.mubr.bf16.mxu1 %v2282_v38 }
  0xb5   : > { %840 = vmatmul.mubr.bf16.gmra.mxu0 %v2284_v39  ;;  %968 = vmatmul.mubr.bf16.gmra.mxu1 %v2285_v40 }
  0xb6   : > { %847 = vmatprep.mubr.bf16.mxu0 %v2286_v41  ;;  %975 = vmatprep.mubr.bf16.mxu1 %v2288_v42 }
  0xbd   : > { %848 = vmatmul.mubr.bf16.gmra.mxu0 %v2290_v43  ;;  %976 = vmatmul.mubr.bf16.gmra.mxu1 %v2291_v44 }
  0xbe   : > { %855 = vmatprep.mubr.bf16.mxu0 %v2292_v45  ;;  %983 = vmatprep.mubr.bf16.mxu1 %v2294_v46 }
  0xc5   : > { %856 = vmatmul.mubr.bf16.gmra.mxu0 %v2296_v47  ;;  %984 = vmatmul.mubr.bf16.gmra.mxu1 %v2297_v48 }
  0xc6   : > { %863 = vmatprep.mubr.bf16.mxu0 %v2298_v49  ;;  %991 = vmatprep.mubr.bf16.mxu1 %v2300_v50 }
  0xcd   : > { %864 = vmatmul.mubr.bf16.gmra.mxu0 %v2302_v51  ;;  %992 = vmatmul.mubr.bf16.gmra.mxu1 %v2303_v52 }
  0xce   : > { %871 = vmatprep.mubr.bf16.mxu0 %v2304_v53  ;;  %999 = vmatprep.mubr.bf16.mxu1 %v2306_v54 }
  0xd5   : > { %872 = vmatmul.mubr.bf16.gmra.mxu0 %v2308_v55  ;;  %1000 = vmatmul.mubr.bf16.gmra.mxu1 %v2309_v56 }
  0xd6   : > { %879 = vmatprep.mubr.bf16.mxu0 %v2310_v57  ;;  %1007 = vmatprep.mubr.bf16.mxu1 %v2312_v58 }
  0xdd   : > { %880 = vmatmul.mubr.bf16.gmra.mxu0 %v2314_v59  ;;  %1008 = vmatmul.mubr.bf16.gmra.mxu1 %v2315_v60 }
  0xde   : > { %887 = vmatprep.mubr.bf16.mxu0 %v2316_v61  ;;  %1015 = vmatprep.mubr.bf16.mxu1 %v2318_v62 }
  0xe5   : > { %888 = vmatmul.mubr.bf16.gmra.mxu0 %v2320_v63  ;;  %1016 = vmatmul.mubr.bf16.gmra.mxu1 %v2321_v0 }
  0xe6   : > { %895 = vmatprep.mubr.bf16.mxu0 %v2322_v1  ;;  %1023 = vmatprep.mubr.bf16.mxu1 %v2324_v2 }
  0xed   : > { %896 = vmatmul.mubr.bf16.gmra.mxu0 %v2326_v3  ;;  %1024 = vmatmul.mubr.bf16.gmra.mxu1 %v2327_v4 }
  0xee   : > { %903 = vmatprep.mubr.bf16.mxu0 %v2328_v5  ;;  %1031 = vmatprep.mubr.bf16.mxu1 %v2330_v6 }
  0xf5   : > { %904 = vmatmul.mubr.bf16.gmra.mxu0 %v2332_v7  ;;  %1032 = vmatmul.mubr.bf16.gmra.mxu1 %v2333_v8 }
  0xf6   : > { %911 = vmatprep.mubr.bf16.mxu0 %v2334_v9  ;;  %1039 = vmatprep.mubr.bf16.mxu1 %v2336_v10 }
  0xfd   : > { %912 = vmatmul.mubr.bf16.gmra.mxu0 %v2338_v11  ;;  %1040 = vmatmul.mubr.bf16.gmra.mxu1 %v2339_v12 }
  0xfe   : > { %919 = vmatprep.mubr.bf16.mxu0 %v2340_v13  ;;  %1047 = vmatprep.mubr.bf16.mxu1 %v2342_v14 }
 0x105   : > { %920 = vmatmul.mubr.bf16.gmra.mxu0 %v2344_v15  ;;  %1048 = vmatmul.mubr.bf16.gmra.mxu1 %v2345_v16 }
 0x14d   : > { %v801_v18 = vpop.f32.mrf.mxu0  ;;  %v929_v19 = vpop.f32.mrf.mxu1 }
 0x14e   : > { %v802_v20 = vadd.f32 %v2774_v17, %v801_v18  ;;  %v930_v21 = vadd.f32 %v2774_v17, %v929_v19 }
 0x14f   : > { %v803_v22 = vpop.f32.mrf.mxu0  ;;  %v931_v23 = vpop.f32.mrf.mxu1 }
 0x150   : > { %v1120_v24 = vmul.f32 0.1, %v802_v20  ;;  %v1152_v25 = vmul.f32 0.1, %v930_v21  ;;  %vm1056_vm0 = vcmp.gt.f32.partialorder %v802_v20, 0.0  ;;  %vm1088_vm1 = vcmp.gt.f32.partialorder %v930_v21, 0.0 }
 0x151   : > { %v804_v26 = vpop.f32.mrf.mxu0  ;;  %v932_v27 = vpop.f32.mrf.mxu1 }
 0x152   : > { %v805_v28 = vadd.f32 %v2774_v17, %v804_v26  ;;  %v933_v29 = vadd.f32 %v2774_v17, %v932_v27  ;;  %v1184_v34 = vsel %vm1056_vm0, %v802_v20, %v1120_v24  ;;  %v1216_v35 = vsel %vm1088_vm1, %v930_v21, %v1152_v25 }
 0x153   : > { %v806_v30 = vpop.f32.mrf.mxu0  ;;  %v934_v31 = vpop.f32.mrf.mxu1 }
 0x154   : > { %vm1057_vm2 = vcmp.gt.f32.partialorder %v805_v28, 0.0  ;;  %v1121_v32 = vmul.f32 0.1, %v805_v28  ;;  %vm1089_vm3 = vcmp.gt.f32.partialorder %v933_v29, 0.0  ;;  %v1153_v33 = vmul.f32 0.1, %v933_v29 }
 0x155   : > { %v809_v36 = vpop.f32.mrf.mxu0  ;;  %v937_v37 = vpop.f32.mrf.mxu1 }
 0x156   : > { %v1185_v38 = vsel %vm1057_vm2, %v805_v28, %v1121_v32  ;;  %v1217_v39 = vsel %vm1089_vm3, %v933_v29, %v1153_v33  ;;  %v810_v40 = vadd.f32 %v2774_v17, %v809_v36  ;;  %v938_v41 = vadd.f32 %v2774_v17, %v937_v37 }
 0x157   : > { %v1924_v42 = vpack.c.bf16 %v1185_v38, %v1184_v34  ;;  %v2004_v43 = vpack.c.bf16 %v1217_v39, %v1216_v35  ;;  %v811_v44 = vpop.f32.mrf.mxu0  ;;  %v939_v45 = vpop.f32.mrf.mxu1 }
 0x158   : > { %v1122_v46 = vmul.f32 0.1, %v810_v40  ;;  %v1154_v47 = vmul.f32 0.1, %v938_v41  ;;  %vm1058_vm4 = vcmp.gt.f32.partialorder %v810_v40, 0.0  ;;  %vm1090_vm5 = vcmp.gt.f32.partialorder %v938_v41, 0.0 }
 0x159   : > { %1925 = vst [vmem:[%s2783_s22] sm:$0xff] %v1924_v42   ;;  %2096 = vst [vmem:[%s2783_s22 + $0x80] sm:$0xff] %v2004_v43   ;;  %v812_v48 = vpop.f32.mrf.mxu0  ;;  %v940_v49 = vpop.f32.mrf.mxu1 }
 0x15a   : > { %v813_v50 = vadd.f32 %v2774_v17, %v812_v48  ;;  %v941_v51 = vadd.f32 %v2774_v17, %v940_v49  ;;  %v1186_v56 = vsel %vm1058_vm4, %v810_v40, %v1122_v46  ;;  %v1218_v57 = vsel %vm1090_vm5, %v938_v41, %v1154_v47 }
 0x15b   : > { %v814_v52 = vpop.f32.mrf.mxu0  ;;  %v942_v53 = vpop.f32.mrf.mxu1 }
 0x15c   : > { %vm1059_vm6 = vcmp.gt.f32.partialorder %v813_v50, 0.0  ;;  %v1123_v54 = vmul.f32 0.1, %v813_v50  ;;  %vm1091_vm7 = vcmp.gt.f32.partialorder %v941_v51, 0.0  ;;  %v1155_v55 = vmul.f32 0.1, %v941_v51 }
 0x15d   : > { %v817_v58 = vpop.f32.mrf.mxu0  ;;  %v945_v59 = vpop.f32.mrf.mxu1 }
 0x15e   : > { %v1187_v60 = vsel %vm1059_vm6, %v813_v50, %v1123_v54  ;;  %v1219_v61 = vsel %vm1091_vm7, %v941_v51, %v1155_v55  ;;  %v818_v62 = vadd.f32 %v2774_v17, %v817_v58  ;;  %v946_v63 = vadd.f32 %v2774_v17, %v945_v59 }
 0x15f   : > { %v1929_v0 = vpack.c.bf16 %v1187_v60, %v1186_v56  ;;  %v2009_v1 = vpack.c.bf16 %v1219_v61, %v1218_v57  ;;  %v819_v2 = vpop.f32.mrf.mxu0  ;;  %v947_v3 = vpop.f32.mrf.mxu1 }
 0x160   : > { %v1124_v4 = vmul.f32 0.1, %v818_v62  ;;  %v1156_v5 = vmul.f32 0.1, %v946_v63  ;;  %vm1060_vm8 = vcmp.gt.f32.partialorder %v818_v62, 0.0  ;;  %vm1092_vm9 = vcmp.gt.f32.partialorder %v946_v63, 0.0 }
 0x161   : > { %2081 = vst [vmem:[%s2783_s22 + $0x8] sm:$0xff] %v1929_v0   ;;  %2097 = vst [vmem:[%s2783_s22 + $0x88] sm:$0xff] %v2009_v1   ;;  %v820_v6 = vpop.f32.mrf.mxu0  ;;  %v948_v7 = vpop.f32.mrf.mxu1 }
 0x162   : > { %v821_v8 = vadd.f32 %v2774_v17, %v820_v6  ;;  %v949_v9 = vadd.f32 %v2774_v17, %v948_v7  ;;  %v1188_v14 = vsel %vm1060_vm8, %v818_v62, %v1124_v4  ;;  %v1220_v15 = vsel %vm1092_vm9, %v946_v63, %v1156_v5 }
 0x163   : > { %v822_v10 = vpop.f32.mrf.mxu0  ;;  %v950_v11 = vpop.f32.mrf.mxu1 }
 0x164   : > { %vm1061_vm10 = vcmp.gt.f32.partialorder %v821_v8, 0.0  ;;  %v1125_v12 = vmul.f32 0.1, %v821_v8  ;;  %vm1093_vm11 = vcmp.gt.f32.partialorder %v949_v9, 0.0  ;;  %v1157_v13 = vmul.f32 0.1, %v949_v9 }
 0x165   : > { %v825_v16 = vpop.f32.mrf.mxu0  ;;  %v953_v18 = vpop.f32.mrf.mxu1 }
 0x166   : > { %v1189_v19 = vsel %vm1061_vm10, %v821_v8, %v1125_v12  ;;  %v1221_v20 = vsel %vm1093_vm11, %v949_v9, %v1157_v13  ;;  %v826_v21 = vadd.f32 %v2774_v17, %v825_v16  ;;  %v954_v22 = vadd.f32 %v2774_v17, %v953_v18 }
 0x167   : > { %v1934_v23 = vpack.c.bf16 %v1189_v19, %v1188_v14  ;;  %v2014_v24 = vpack.c.bf16 %v1221_v20, %v1220_v15  ;;  %v827_v25 = vpop.f32.mrf.mxu0  ;;  %v955_v26 = vpop.f32.mrf.mxu1 }
 0x168   : > { %v1126_v27 = vmul.f32 0.1, %v826_v21  ;;  %v1158_v28 = vmul.f32 0.1, %v954_v22  ;;  %vm1062_vm12 = vcmp.gt.f32.partialorder %v826_v21, 0.0  ;;  %vm1094_vm13 = vcmp.gt.f32.partialorder %v954_v22, 0.0 }
 0x169   : > { %2082 = vst [vmem:[%s2783_s22 + $0x10] sm:$0xff] %v1934_v23   ;;  %2098 = vst [vmem:[%s2783_s22 + $0x90] sm:$0xff] %v2014_v24   ;;  %v828_v29 = vpop.f32.mrf.mxu0  ;;  %v956_v30 = vpop.f32.mrf.mxu1 }
 0x16a   : > { %v829_v31 = vadd.f32 %v2774_v17, %v828_v29  ;;  %v957_v32 = vadd.f32 %v2774_v17, %v956_v30  ;;  %v1190_v37 = vsel %vm1062_vm12, %v826_v21, %v1126_v27  ;;  %v1222_v38 = vsel %vm1094_vm13, %v954_v22, %v1158_v28 }
 0x16b   : > { %v830_v33 = vpop.f32.mrf.mxu0  ;;  %v958_v34 = vpop.f32.mrf.mxu1 }
 0x16c   : > { %vm1063_vm14 = vcmp.gt.f32.partialorder %v829_v31, 0.0  ;;  %v1127_v35 = vmul.f32 0.1, %v829_v31  ;;  %vm1095_vm15 = vcmp.gt.f32.partialorder %v957_v32, 0.0  ;;  %v1159_v36 = vmul.f32 0.1, %v957_v32 }
 0x16d   : > { %v833_v39 = vpop.f32.mrf.mxu0  ;;  %v961_v40 = vpop.f32.mrf.mxu1 }
 0x16e   : > { %v1191_v41 = vsel %vm1063_vm14, %v829_v31, %v1127_v35  ;;  %v1223_v42 = vsel %vm1095_vm15, %v957_v32, %v1159_v36  ;;  %v834_v43 = vadd.f32 %v2774_v17, %v833_v39  ;;  %v962_v44 = vadd.f32 %v2774_v17, %v961_v40 }
 0x16f   : > { %v1939_v45 = vpack.c.bf16 %v1191_v41, %v1190_v37  ;;  %v2019_v46 = vpack.c.bf16 %v1223_v42, %v1222_v38  ;;  %v835_v47 = vpop.f32.mrf.mxu0  ;;  %v963_v48 = vpop.f32.mrf.mxu1 }
 0x170   : > { %v1128_v49 = vmul.f32 0.1, %v834_v43  ;;  %v1160_v50 = vmul.f32 0.1, %v962_v44  ;;  %vm1064_vm0 = vcmp.gt.f32.partialorder %v834_v43, 0.0  ;;  %vm1096_vm1 = vcmp.gt.f32.partialorder %v962_v44, 0.0 }
 0x171   : > { %2083 = vst [vmem:[%s2783_s22 + $0x18] sm:$0xff] %v1939_v45   ;;  %2099 = vst [vmem:[%s2783_s22 + $0x98] sm:$0xff] %v2019_v46   ;;  %v836_v51 = vpop.f32.mrf.mxu0  ;;  %v964_v52 = vpop.f32.mrf.mxu1 }
 0x172   : > { %v837_v53 = vadd.f32 %v2774_v17, %v836_v51  ;;  %v965_v54 = vadd.f32 %v2774_v17, %v964_v52  ;;  %v1192_v59 = vsel %vm1064_vm0, %v834_v43, %v1128_v49  ;;  %v1224_v60 = vsel %vm1096_vm1, %v962_v44, %v1160_v50 }
 0x173   : > { %v838_v55 = vpop.f32.mrf.mxu0  ;;  %v966_v56 = vpop.f32.mrf.mxu1 }
 0x174   : > { %vm1065_vm2 = vcmp.gt.f32.partialorder %v837_v53, 0.0  ;;  %v1129_v57 = vmul.f32 0.1, %v837_v53  ;;  %vm1097_vm3 = vcmp.gt.f32.partialorder %v965_v54, 0.0  ;;  %v1161_v58 = vmul.f32 0.1, %v965_v54 }
 0x175   : > { %v841_v61 = vpop.f32.mrf.mxu0  ;;  %v969_v62 = vpop.f32.mrf.mxu1 }
 0x176   : > { %v1193_v63 = vsel %vm1065_vm2, %v837_v53, %v1129_v57  ;;  %v1225_v0 = vsel %vm1097_vm3, %v965_v54, %v1161_v58  ;;  %v842_v1 = vadd.f32 %v2774_v17, %v841_v61  ;;  %v970_v2 = vadd.f32 %v2774_v17, %v969_v62 }
 0x177   : > { %v1944_v3 = vpack.c.bf16 %v1193_v63, %v1192_v59  ;;  %v2024_v4 = vpack.c.bf16 %v1225_v0, %v1224_v60  ;;  %v843_v5 = vpop.f32.mrf.mxu0  ;;  %v971_v6 = vpop.f32.mrf.mxu1 }
 0x178   : > { %v1130_v7 = vmul.f32 0.1, %v842_v1  ;;  %v1162_v8 = vmul.f32 0.1, %v970_v2  ;;  %vm1066_vm4 = vcmp.gt.f32.partialorder %v842_v1, 0.0  ;;  %vm1098_vm5 = vcmp.gt.f32.partialorder %v970_v2, 0.0 }
 0x179   : > { %2084 = vst [vmem:[%s2783_s22 + $0x20] sm:$0xff] %v1944_v3   ;;  %2100 = vst [vmem:[%s2783_s22 + $0xa0] sm:$0xff] %v2024_v4   ;;  %v844_v9 = vpop.f32.mrf.mxu0  ;;  %v972_v10 = vpop.f32.mrf.mxu1 }
 0x17a   : > { %v845_v11 = vadd.f32 %v2774_v17, %v844_v9  ;;  %v973_v12 = vadd.f32 %v2774_v17, %v972_v10  ;;  %v1194_v18 = vsel %vm1066_vm4, %v842_v1, %v1130_v7  ;;  %v1226_v19 = vsel %vm1098_vm5, %v970_v2, %v1162_v8 }
 0x17b   : > { %v846_v13 = vpop.f32.mrf.mxu0  ;;  %v974_v14 = vpop.f32.mrf.mxu1 }
 0x17c   : > { %vm1067_vm6 = vcmp.gt.f32.partialorder %v845_v11, 0.0  ;;  %v1131_v15 = vmul.f32 0.1, %v845_v11  ;;  %vm1099_vm7 = vcmp.gt.f32.partialorder %v973_v12, 0.0  ;;  %v1163_v16 = vmul.f32 0.1, %v973_v12 }
 0x17d   : > { %v849_v20 = vpop.f32.mrf.mxu0  ;;  %v977_v21 = vpop.f32.mrf.mxu1 }
 0x17e   : > { %v1195_v22 = vsel %vm1067_vm6, %v845_v11, %v1131_v15  ;;  %v1227_v23 = vsel %vm1099_vm7, %v973_v12, %v1163_v16  ;;  %v850_v24 = vadd.f32 %v2774_v17, %v849_v20  ;;  %v978_v25 = vadd.f32 %v2774_v17, %v977_v21 }
 0x17f   : > { %v1949_v26 = vpack.c.bf16 %v1195_v22, %v1194_v18  ;;  %v2029_v27 = vpack.c.bf16 %v1227_v23, %v1226_v19  ;;  %v851_v28 = vpop.f32.mrf.mxu0  ;;  %v979_v29 = vpop.f32.mrf.mxu1 }
 0x180   : > { %v1132_v30 = vmul.f32 0.1, %v850_v24  ;;  %v1164_v31 = vmul.f32 0.1, %v978_v25  ;;  %vm1068_vm8 = vcmp.gt.f32.partialorder %v850_v24, 0.0  ;;  %vm1100_vm9 = vcmp.gt.f32.partialorder %v978_v25, 0.0 }
 0x181   : > { %2085 = vst [vmem:[%s2783_s22 + $0x28] sm:$0xff] %v1949_v26   ;;  %2101 = vst [vmem:[%s2783_s22 + $0xa8] sm:$0xff] %v2029_v27   ;;  %v852_v32 = vpop.f32.mrf.mxu0  ;;  %v980_v33 = vpop.f32.mrf.mxu1 }
 0x182   : > { %v853_v34 = vadd.f32 %v2774_v17, %v852_v32  ;;  %v981_v35 = vadd.f32 %v2774_v17, %v980_v33  ;;  %v1196_v40 = vsel %vm1068_vm8, %v850_v24, %v1132_v30  ;;  %v1228_v41 = vsel %vm1100_vm9, %v978_v25, %v1164_v31 }
 0x183   : > { %v854_v36 = vpop.f32.mrf.mxu0  ;;  %v982_v37 = vpop.f32.mrf.mxu1 }
 0x184   : > { %vm1069_vm10 = vcmp.gt.f32.partialorder %v853_v34, 0.0  ;;  %v1133_v38 = vmul.f32 0.1, %v853_v34  ;;  %vm1101_vm11 = vcmp.gt.f32.partialorder %v981_v35, 0.0  ;;  %v1165_v39 = vmul.f32 0.1, %v981_v35 }
 0x185   : > { %v857_v42 = vpop.f32.mrf.mxu0  ;;  %v985_v43 = vpop.f32.mrf.mxu1 }
 0x186   : > { %v1197_v44 = vsel %vm1069_vm10, %v853_v34, %v1133_v38  ;;  %v1229_v45 = vsel %vm1101_vm11, %v981_v35, %v1165_v39  ;;  %v858_v46 = vadd.f32 %v2774_v17, %v857_v42  ;;  %v986_v47 = vadd.f32 %v2774_v17, %v985_v43 }
 0x187   : > { %v1954_v48 = vpack.c.bf16 %v1197_v44, %v1196_v40  ;;  %v2034_v49 = vpack.c.bf16 %v1229_v45, %v1228_v41  ;;  %v859_v50 = vpop.f32.mrf.mxu0  ;;  %v987_v51 = vpop.f32.mrf.mxu1 }
 0x188   : > { %v1134_v52 = vmul.f32 0.1, %v858_v46  ;;  %v1166_v53 = vmul.f32 0.1, %v986_v47  ;;  %vm1070_vm12 = vcmp.gt.f32.partialorder %v858_v46, 0.0  ;;  %vm1102_vm13 = vcmp.gt.f32.partialorder %v986_v47, 0.0 }
 0x189   : > { %2086 = vst [vmem:[%s2783_s22 + $0x30] sm:$0xff] %v1954_v48   ;;  %2102 = vst [vmem:[%s2783_s22 + $0xb0] sm:$0xff] %v2034_v49   ;;  %v860_v54 = vpop.f32.mrf.mxu0  ;;  %v988_v55 = vpop.f32.mrf.mxu1 }
 0x18a   : > { %v861_v56 = vadd.f32 %v2774_v17, %v860_v54  ;;  %v989_v57 = vadd.f32 %v2774_v17, %v988_v55  ;;  %v1198_v62 = vsel %vm1070_vm12, %v858_v46, %v1134_v52  ;;  %v1230_v63 = vsel %vm1102_vm13, %v986_v47, %v1166_v53 }
 0x18b   : > { %v862_v58 = vpop.f32.mrf.mxu0  ;;  %v990_v59 = vpop.f32.mrf.mxu1 }
 0x18c   : > { %vm1071_vm14 = vcmp.gt.f32.partialorder %v861_v56, 0.0  ;;  %v1135_v60 = vmul.f32 0.1, %v861_v56  ;;  %vm1103_vm15 = vcmp.gt.f32.partialorder %v989_v57, 0.0  ;;  %v1167_v61 = vmul.f32 0.1, %v989_v57 }
 0x18d   : > { %v865_v0 = vpop.f32.mrf.mxu0  ;;  %v993_v1 = vpop.f32.mrf.mxu1 }
 0x18e   : > { %v1199_v2 = vsel %vm1071_vm14, %v861_v56, %v1135_v60  ;;  %v1231_v3 = vsel %vm1103_vm15, %v989_v57, %v1167_v61  ;;  %v866_v4 = vadd.f32 %v2774_v17, %v865_v0  ;;  %v994_v5 = vadd.f32 %v2774_v17, %v993_v1 }
 0x18f   : > { %v1959_v6 = vpack.c.bf16 %v1199_v2, %v1198_v62  ;;  %v2039_v7 = vpack.c.bf16 %v1231_v3, %v1230_v63  ;;  %v867_v8 = vpop.f32.mrf.mxu0  ;;  %v995_v9 = vpop.f32.mrf.mxu1 }
 0x190   : > { %v1136_v10 = vmul.f32 0.1, %v866_v4  ;;  %v1168_v11 = vmul.f32 0.1, %v994_v5  ;;  %vm1072_vm0 = vcmp.gt.f32.partialorder %v866_v4, 0.0  ;;  %vm1104_vm1 = vcmp.gt.f32.partialorder %v994_v5, 0.0 }
 0x191   : > { %2087 = vst [vmem:[%s2783_s22 + $0x38] sm:$0xff] %v1959_v6   ;;  %2103 = vst [vmem:[%s2783_s22 + $0xb8] sm:$0xff] %v2039_v7   ;;  %v868_v12 = vpop.f32.mrf.mxu0  ;;  %v996_v13 = vpop.f32.mrf.mxu1 }
 0x192   : > { %v869_v14 = vadd.f32 %v2774_v17, %v868_v12  ;;  %v997_v15 = vadd.f32 %v2774_v17, %v996_v13  ;;  %v1200_v21 = vsel %vm1072_vm0, %v866_v4, %v1136_v10  ;;  %v1232_v22 = vsel %vm1104_vm1, %v994_v5, %v1168_v11 }
 0x193   : > { %v870_v16 = vpop.f32.mrf.mxu0  ;;  %v998_v18 = vpop.f32.mrf.mxu1 }
 0x194   : > { %vm1073_vm2 = vcmp.gt.f32.partialorder %v869_v14, 0.0  ;;  %v1137_v19 = vmul.f32 0.1, %v869_v14  ;;  %vm1105_vm3 = vcmp.gt.f32.partialorder %v997_v15, 0.0  ;;  %v1169_v20 = vmul.f32 0.1, %v997_v15 }
 0x195   : > { %v873_v23 = vpop.f32.mrf.mxu0  ;;  %v1001_v24 = vpop.f32.mrf.mxu1 }
 0x196   : > { %v1201_v25 = vsel %vm1073_vm2, %v869_v14, %v1137_v19  ;;  %v1233_v26 = vsel %vm1105_vm3, %v997_v15, %v1169_v20  ;;  %v874_v27 = vadd.f32 %v2774_v17, %v873_v23  ;;  %v1002_v28 = vadd.f32 %v2774_v17, %v1001_v24 }
 0x197   : > { %v1964_v29 = vpack.c.bf16 %v1201_v25, %v1200_v21  ;;  %v2044_v30 = vpack.c.bf16 %v1233_v26, %v1232_v22  ;;  %v875_v31 = vpop.f32.mrf.mxu0  ;;  %v1003_v32 = vpop.f32.mrf.mxu1 }
 0x198   : > { %v1138_v33 = vmul.f32 0.1, %v874_v27  ;;  %v1170_v34 = vmul.f32 0.1, %v1002_v28  ;;  %vm1074_vm4 = vcmp.gt.f32.partialorder %v874_v27, 0.0  ;;  %vm1106_vm5 = vcmp.gt.f32.partialorder %v1002_v28, 0.0 }
 0x199   : > { %2088 = vst [vmem:[%s2783_s22 + $0x40] sm:$0xff] %v1964_v29   ;;  %2104 = vst [vmem:[%s2783_s22 + $0xc0] sm:$0xff] %v2044_v30   ;;  %v876_v35 = vpop.f32.mrf.mxu0  ;;  %v1004_v36 = vpop.f32.mrf.mxu1 }
 0x19a   : > { %v877_v37 = vadd.f32 %v2774_v17, %v876_v35  ;;  %v1005_v38 = vadd.f32 %v2774_v17, %v1004_v36  ;;  %v1202_v43 = vsel %vm1074_vm4, %v874_v27, %v1138_v33  ;;  %v1234_v44 = vsel %vm1106_vm5, %v1002_v28, %v1170_v34 }
 0x19b   : > { %v878_v39 = vpop.f32.mrf.mxu0  ;;  %v1006_v40 = vpop.f32.mrf.mxu1 }
 0x19c   : > { %vm1075_vm6 = vcmp.gt.f32.partialorder %v877_v37, 0.0  ;;  %v1139_v41 = vmul.f32 0.1, %v877_v37  ;;  %vm1107_vm7 = vcmp.gt.f32.partialorder %v1005_v38, 0.0  ;;  %v1171_v42 = vmul.f32 0.1, %v1005_v38 }
 0x19d   : > { %v881_v45 = vpop.f32.mrf.mxu0  ;;  %v1009_v46 = vpop.f32.mrf.mxu1 }
 0x19e   : > { %v1203_v47 = vsel %vm1075_vm6, %v877_v37, %v1139_v41  ;;  %v1235_v48 = vsel %vm1107_vm7, %v1005_v38, %v1171_v42  ;;  %v882_v49 = vadd.f32 %v2774_v17, %v881_v45  ;;  %v1010_v50 = vadd.f32 %v2774_v17, %v1009_v46 }
 0x19f   : > { %v1969_v51 = vpack.c.bf16 %v1203_v47, %v1202_v43  ;;  %v2049_v52 = vpack.c.bf16 %v1235_v48, %v1234_v44  ;;  %v883_v53 = vpop.f32.mrf.mxu0  ;;  %v1011_v54 = vpop.f32.mrf.mxu1 }
 0x1a0   : > { %v1140_v55 = vmul.f32 0.1, %v882_v49  ;;  %v1172_v56 = vmul.f32 0.1, %v1010_v50  ;;  %vm1076_vm8 = vcmp.gt.f32.partialorder %v882_v49, 0.0  ;;  %vm1108_vm9 = vcmp.gt.f32.partialorder %v1010_v50, 0.0 }
 0x1a1   : > { %2089 = vst [vmem:[%s2783_s22 + $0x48] sm:$0xff] %v1969_v51   ;;  %2105 = vst [vmem:[%s2783_s22 + $0xc8] sm:$0xff] %v2049_v52   ;;  %v884_v57 = vpop.f32.mrf.mxu0  ;;  %v1012_v58 = vpop.f32.mrf.mxu1 }
 0x1a2   : > { %v885_v59 = vadd.f32 %v2774_v17, %v884_v57  ;;  %v1013_v60 = vadd.f32 %v2774_v17, %v1012_v58  ;;  %v1204_v1 = vsel %vm1076_vm8, %v882_v49, %v1140_v55  ;;  %v1236_v2 = vsel %vm1108_vm9, %v1010_v50, %v1172_v56 }
 0x1a3   : > { %v886_v61 = vpop.f32.mrf.mxu0  ;;  %v1014_v62 = vpop.f32.mrf.mxu1 }
 0x1a4   : > { %vm1077_vm10 = vcmp.gt.f32.partialorder %v885_v59, 0.0  ;;  %v1141_v63 = vmul.f32 0.1, %v885_v59  ;;  %vm1109_vm11 = vcmp.gt.f32.partialorder %v1013_v60, 0.0  ;;  %v1173_v0 = vmul.f32 0.1, %v1013_v60 }
 0x1a5   : > { %v889_v3 = vpop.f32.mrf.mxu0  ;;  %v1017_v4 = vpop.f32.mrf.mxu1 }
 0x1a6   : > { %v1205_v5 = vsel %vm1077_vm10, %v885_v59, %v1141_v63  ;;  %v1237_v6 = vsel %vm1109_vm11, %v1013_v60, %v1173_v0  ;;  %v890_v7 = vadd.f32 %v2774_v17, %v889_v3  ;;  %v1018_v8 = vadd.f32 %v2774_v17, %v1017_v4 }
 0x1a7   : > { %v1974_v9 = vpack.c.bf16 %v1205_v5, %v1204_v1  ;;  %v2054_v10 = vpack.c.bf16 %v1237_v6, %v1236_v2  ;;  %v891_v11 = vpop.f32.mrf.mxu0  ;;  %v1019_v12 = vpop.f32.mrf.mxu1 }
 0x1a8   : > { %v1142_v13 = vmul.f32 0.1, %v890_v7  ;;  %v1174_v14 = vmul.f32 0.1, %v1018_v8  ;;  %vm1078_vm12 = vcmp.gt.f32.partialorder %v890_v7, 0.0  ;;  %vm1110_vm13 = vcmp.gt.f32.partialorder %v1018_v8, 0.0 }
 0x1a9   : > { %2090 = vst [vmem:[%s2783_s22 + $0x50] sm:$0xff] %v1974_v9   ;;  %2106 = vst [vmem:[%s2783_s22 + $0xd0] sm:$0xff] %v2054_v10   ;;  %v892_v15 = vpop.f32.mrf.mxu0  ;;  %v1020_v16 = vpop.f32.mrf.mxu1 }
 0x1aa   : > { %v893_v18 = vadd.f32 %v2774_v17, %v892_v15  ;;  %v1021_v19 = vadd.f32 %v2774_v17, %v1020_v16  ;;  %v1206_v24 = vsel %vm1078_vm12, %v890_v7, %v1142_v13  ;;  %v1238_v25 = vsel %vm1110_vm13, %v1018_v8, %v1174_v14 }
 0x1ab   : > { %v894_v20 = vpop.f32.mrf.mxu0  ;;  %v1022_v21 = vpop.f32.mrf.mxu1 }
 0x1ac   : > { %vm1079_vm14 = vcmp.gt.f32.partialorder %v893_v18, 0.0  ;;  %v1143_v22 = vmul.f32 0.1, %v893_v18  ;;  %vm1111_vm15 = vcmp.gt.f32.partialorder %v1021_v19, 0.0  ;;  %v1175_v23 = vmul.f32 0.1, %v1021_v19 }
 0x1ad   : > { %v897_v26 = vpop.f32.mrf.mxu0  ;;  %v1025_v27 = vpop.f32.mrf.mxu1 }
 0x1ae   : > { %v1207_v28 = vsel %vm1079_vm14, %v893_v18, %v1143_v22  ;;  %v1239_v29 = vsel %vm1111_vm15, %v1021_v19, %v1175_v23  ;;  %v898_v30 = vadd.f32 %v2774_v17, %v897_v26  ;;  %v1026_v31 = vadd.f32 %v2774_v17, %v1025_v27 }
 0x1af   : > { %v1979_v32 = vpack.c.bf16 %v1207_v28, %v1206_v24  ;;  %v2059_v33 = vpack.c.bf16 %v1239_v29, %v1238_v25  ;;  %v899_v34 = vpop.f32.mrf.mxu0  ;;  %v1027_v35 = vpop.f32.mrf.mxu1 }
 0x1b0   : > { %v1144_v36 = vmul.f32 0.1, %v898_v30  ;;  %v1176_v37 = vmul.f32 0.1, %v1026_v31  ;;  %vm1080_vm0 = vcmp.gt.f32.partialorder %v898_v30, 0.0  ;;  %vm1112_vm1 = vcmp.gt.f32.partialorder %v1026_v31, 0.0 }
 0x1b1   : > { %2091 = vst [vmem:[%s2783_s22 + $0x58] sm:$0xff] %v1979_v32   ;;  %2107 = vst [vmem:[%s2783_s22 + $0xd8] sm:$0xff] %v2059_v33   ;;  %v900_v38 = vpop.f32.mrf.mxu0  ;;  %v1028_v39 = vpop.f32.mrf.mxu1 }
 0x1b2   : > { %v901_v40 = vadd.f32 %v2774_v17, %v900_v38  ;;  %v1029_v41 = vadd.f32 %v2774_v17, %v1028_v39  ;;  %v1208_v46 = vsel %vm1080_vm0, %v898_v30, %v1144_v36  ;;  %v1240_v47 = vsel %vm1112_vm1, %v1026_v31, %v1176_v37 }
 0x1b3   : > { %v902_v42 = vpop.f32.mrf.mxu0  ;;  %v1030_v43 = vpop.f32.mrf.mxu1 }
 0x1b4   : > { %vm1081_vm2 = vcmp.gt.f32.partialorder %v901_v40, 0.0  ;;  %v1145_v44 = vmul.f32 0.1, %v901_v40  ;;  %vm1113_vm3 = vcmp.gt.f32.partialorder %v1029_v41, 0.0  ;;  %v1177_v45 = vmul.f32 0.1, %v1029_v41 }
 0x1b5   : > { %v905_v48 = vpop.f32.mrf.mxu0  ;;  %v1033_v49 = vpop.f32.mrf.mxu1 }
 0x1b6   : > { %v1209_v50 = vsel %vm1081_vm2, %v901_v40, %v1145_v44  ;;  %v1241_v51 = vsel %vm1113_vm3, %v1029_v41, %v1177_v45  ;;  %v906_v52 = vadd.f32 %v2774_v17, %v905_v48  ;;  %v1034_v53 = vadd.f32 %v2774_v17, %v1033_v49 }
 0x1b7   : > { %v1984_v54 = vpack.c.bf16 %v1209_v50, %v1208_v46  ;;  %v2064_v55 = vpack.c.bf16 %v1241_v51, %v1240_v47  ;;  %v907_v56 = vpop.f32.mrf.mxu0  ;;  %v1035_v57 = vpop.f32.mrf.mxu1 }
 0x1b8   : > { %v1146_v58 = vmul.f32 0.1, %v906_v52  ;;  %v1178_v59 = vmul.f32 0.1, %v1034_v53  ;;  %vm1082_vm4 = vcmp.gt.f32.partialorder %v906_v52, 0.0  ;;  %vm1114_vm5 = vcmp.gt.f32.partialorder %v1034_v53, 0.0 }
 0x1b9   : > { %2092 = vst [vmem:[%s2783_s22 + $0x60] sm:$0xff] %v1984_v54   ;;  %2108 = vst [vmem:[%s2783_s22 + $0xe0] sm:$0xff] %v2064_v55   ;;  %v908_v60 = vpop.f32.mrf.mxu0  ;;  %v1036_v61 = vpop.f32.mrf.mxu1 }
 0x1ba   : > { %v909_v62 = vadd.f32 %v2774_v17, %v908_v60  ;;  %v1037_v63 = vadd.f32 %v2774_v17, %v1036_v61  ;;  %v1210_v4 = vsel %vm1082_vm4, %v906_v52, %v1146_v58  ;;  %v1242_v5 = vsel %vm1114_vm5, %v1034_v53, %v1178_v59 }
 0x1bb   : > { %v910_v0 = vpop.f32.mrf.mxu0  ;;  %v1038_v1 = vpop.f32.mrf.mxu1 }
 0x1bc   : > { %vm1083_vm6 = vcmp.gt.f32.partialorder %v909_v62, 0.0  ;;  %v1147_v2 = vmul.f32 0.1, %v909_v62  ;;  %vm1115_vm7 = vcmp.gt.f32.partialorder %v1037_v63, 0.0  ;;  %v1179_v3 = vmul.f32 0.1, %v1037_v63 }
 0x1bd   : > { %v913_v6 = vpop.f32.mrf.mxu0  ;;  %v1041_v7 = vpop.f32.mrf.mxu1 }
 0x1be   : > { %v1211_v8 = vsel %vm1083_vm6, %v909_v62, %v1147_v2  ;;  %v1243_v9 = vsel %vm1115_vm7, %v1037_v63, %v1179_v3  ;;  %v914_v10 = vadd.f32 %v2774_v17, %v913_v6  ;;  %v1042_v11 = vadd.f32 %v2774_v17, %v1041_v7 }
 0x1bf   : > { %v1989_v12 = vpack.c.bf16 %v1211_v8, %v1210_v4  ;;  %v2069_v13 = vpack.c.bf16 %v1243_v9, %v1242_v5  ;;  %v915_v14 = vpop.f32.mrf.mxu0  ;;  %v1043_v15 = vpop.f32.mrf.mxu1 }
 0x1c0   : > { %v1148_v16 = vmul.f32 0.1, %v914_v10  ;;  %v1180_v18 = vmul.f32 0.1, %v1042_v11  ;;  %vm1084_vm8 = vcmp.gt.f32.partialorder %v914_v10, 0.0  ;;  %vm1116_vm9 = vcmp.gt.f32.partialorder %v1042_v11, 0.0 }
 0x1c1   : > { %2093 = vst [vmem:[%s2783_s22 + $0x68] sm:$0xff] %v1989_v12   ;;  %2109 = vst [vmem:[%s2783_s22 + $0xe8] sm:$0xff] %v2069_v13   ;;  %v916_v19 = vpop.f32.mrf.mxu0  ;;  %v1044_v20 = vpop.f32.mrf.mxu1 }
 0x1c2   : > { %v917_v21 = vadd.f32 %v2774_v17, %v916_v19  ;;  %v1045_v22 = vadd.f32 %v2774_v17, %v1044_v20  ;;  %v1212_v27 = vsel %vm1084_vm8, %v914_v10, %v1148_v16  ;;  %v1244_v28 = vsel %vm1116_vm9, %v1042_v11, %v1180_v18 }
 0x1c3   : > { %v918_v23 = vpop.f32.mrf.mxu0  ;;  %v1046_v24 = vpop.f32.mrf.mxu1 }
 0x1c4   : > { %vm1085_vm10 = vcmp.gt.f32.partialorder %v917_v21, 0.0  ;;  %v1149_v25 = vmul.f32 0.1, %v917_v21  ;;  %vm1117_vm11 = vcmp.gt.f32.partialorder %v1045_v22, 0.0  ;;  %v1181_v26 = vmul.f32 0.1, %v1045_v22 }
 0x1c5   : > { %v921_v29 = vpop.f32.mrf.mxu0  ;;  %v1049_v30 = vpop.f32.mrf.mxu1 }
 0x1c6   : > { %v1213_v31 = vsel %vm1085_vm10, %v917_v21, %v1149_v25  ;;  %v1245_v32 = vsel %vm1117_vm11, %v1045_v22, %v1181_v26  ;;  %v922_v33 = vadd.f32 %v2774_v17, %v921_v29  ;;  %v1050_v34 = vadd.f32 %v2774_v17, %v1049_v30 }
 0x1c7   : > { %v1994_v35 = vpack.c.bf16 %v1213_v31, %v1212_v27  ;;  %v2074_v36 = vpack.c.bf16 %v1245_v32, %v1244_v28  ;;  %v923_v37 = vpop.f32.mrf.mxu0  ;;  %v1051_v38 = vpop.f32.mrf.mxu1 }
 0x1c8   : > { %v1150_v41 = vmul.f32 0.1, %v922_v33  ;;  %v1182_v42 = vmul.f32 0.1, %v1050_v34  ;;  %vm1086_vm12 = vcmp.gt.f32.partialorder %v922_v33, 0.0  ;;  %vm1118_vm13 = vcmp.gt.f32.partialorder %v1050_v34, 0.0 }
 0x1c9   : > { %2094 = vst [vmem:[%s2783_s22 + $0x70] sm:$0xff] %v1994_v35   ;;  %2110 = vst [vmem:[%s2783_s22 + $0xf0] sm:$0xff] %v2074_v36   ;;  %v924_v39 = vpop.f32.mrf.mxu0  ;;  %v1052_v40 = vpop.f32.mrf.mxu1 }
 0x1ca   : > { %v925_v43 = vadd.f32 %v2774_v17, %v924_v39  ;;  %v1053_v44 = vadd.f32 %v2774_v17, %v1052_v40  ;;  %v1214_v49 = vsel %vm1086_vm12, %v922_v33, %v1150_v41  ;;  %v1246_v50 = vsel %vm1118_vm13, %v1050_v34, %v1182_v42 }
 0x1cb   : > { %v926_v45 = vpop.f32.mrf.mxu0  ;;  %v1054_v46 = vpop.f32.mrf.mxu1 }
 0x1cc   : > { %vm1087_vm14 = vcmp.gt.f32.partialorder %v925_v43, 0.0  ;;  %v1151_v47 = vmul.f32 0.1, %v925_v43  ;;  %vm1119_vm15 = vcmp.gt.f32.partialorder %v1053_v44, 0.0  ;;  %v1183_v48 = vmul.f32 0.1, %v1053_v44 }
 0x1ce   : > { %v1215_v51 = vsel %vm1087_vm14, %v925_v43, %v1151_v47  ;;  %v1247_v52 = vsel %vm1119_vm15, %v1053_v44, %v1183_v48 }
 0x1cf   : > { %v1999_v17 = vpack.c.bf16 %v1215_v51, %v1214_v49  ;;  %v2079_v53 = vpack.c.bf16 %v1247_v52, %v1246_v50 }
 0x1d1   : > { %2095 = vst [vmem:[%s2783_s22 + $0x78] sm:$0xff] %v1999_v17   ;;  %2111 = vst [vmem:[%s2783_s22 + $0xf8] sm:$0xff] %v2079_v53  }
 0x1d2   : > { %2439 = shalt.err (!%p2436_p0)
}
 0x1d3   : > { %s2440_s28 = scalar_lea.hbm %s2878_s9, 4096  ;;  %s2444_s5 = scalar_lea.hbm %s2932_s3, 32768 }
 0x1d4   : > { %p2441_p5 = scmp.ne.s32.totalorder %s2878_s9, %s2440_s28  ;;  %p2445_p11 = scmp.lt.s32.totalorder %s2878_s9, %s2932_s3 }
 0x1d5   : > { %p2446_p7 = scmp.lt.s32.totalorder %s2444_s5, %s2440_s28 }
 0x1d6   : > { %p2442_p1 = pnand %p2441_p5, %p2637_p12 }
 0x1d7   : > { %p2447_p9 = por %p2446_p7, %p2445_p11 }
 0x1d8   : > { %p2443_p6 = pneg %p2442_p1 }
 0x1da   : > { %p2448_p4 = pnand %p2447_p9, %p2443_p6 }
 0x1dc   : > { %2451 = shalt.err (!%p2448_p4)
}
 0x1dd   : > { %s2521_s22 = smov 64   ;;  %s2522_s24 = smov 4  }
 0x1de   : > { %2154 = dma.vmem_to_hbm [thread:$0]  (%p2637_p12), %s2880_s6, 4096, %s2878_s9, %s1569_s15, %s2521_s22, %s2521_s22, %s2522_s24  }
 0x1df PF: > { %p2176_p8 = scmp.ge.s32.totalorder %s2510_s17, 2  ;;  %s1598_s8 = sand.u32 1, %s2490_s12  }
 0x1e0   : > { %p2944_p13 = scmp.ne.s32.totalorder %s2938_s23, 0  ;;  %s1599_s21 = scalar_lea.sflag [#allocation4], %s1598_s8 }
 0x1e2   : > { %p2168_p10 = pnand %p2176_p8, %p2944_p13 }
 0x1e4   : > { %p2169_p2 = pneg %p2168_p10 }
 0x1e6   : > { %2485 = dma.done.wait (%p2169_p2), %s1599_s21, 4096  }
 0x1e7   : > { %2487 = vsyncadd (%p2169_p2), %s1599_s21, 4294963200  ;;  %s20_s17 = sadd.s32 1, %s2510_s17   ;;  %s2945_s12 = smov %s2494_s13 }
 0x1e8   : > { %p17_p3 = scmp.ge.s32.totalorder %s20_s17, 10   ;;  %s2946_s13 = smov %s2498_s14 }
 0x1e9   : > { %s2947_s14 = smov %s2646_s30  ;;  %s2948_s15 = smov %s2506_s16 }
 0x1ea   : > { %s2949_s16 = smov %s2951_s18  ;;  %19 = sbr.rel (!%p17_p3) target bundleno = 7 (0x7), region = 87 }
 0x1ef   :  { %1604 = vsyncpa [#allocation3], 1 }
 0x1f0   :  { %1606 = vsyncpa [#allocation3 + $0x1], 1 }
 0x1f1   :  { %1607 = vsyncpa [#allocation6], 1 }
 0x1f2   :  { %1608 = vsyncpa [#allocation4], 1 }
 0x1f3   :  { %1610 = vsyncpa [#allocation4 + $0x1], 1 }

</bundles_post_ra>
